<compile_context>
chip_gen: v7x
topology: tpu7x:2x2x1
jax: 0.10.0
libtpu: 0.0.40
codegen_flags: <defaults>
</compile_context>

<pallas_src>
import math

import jax
import jax.numpy as jnp
from jax.experimental import pallas as pl
from jax.experimental.pallas import tpu as pltpu


def _vmem_capacity_bytes(default=64 << 20):
    try:
        info = pltpu.get_tpu_info()
        cap = getattr(info, "vmem_capacity_bytes", None)
        if cap:
            return int(cap)
    except Exception:
        pass
    return default


# ----------------------------------------------------------------------------
# Fused kernel: per graph -> conv_in block, pool block, dense_mincut_pool,
# block-1 on the coarsened graph.  Emits one packed lane-dense row per graph.
# ----------------------------------------------------------------------------
def _make_fused_kernel(bt, compute_dtype):
    cdt = compute_dtype
    f32 = jnp.float32

    def kernel(x_ref, adj_ref, st_ref,
               w01_ref, b01_ref, w12_ref, b12_ref, wa_ref, wb_ref, bjk_ref,
               qw0_ref, qb0_ref, qw1_ref, qb1_ref, qwa_ref, qwb_ref, qbl_ref,
               out_ref):
        H = qw0_ref.shape[1]
        HK = wa_ref.shape[1]
        K = HK - H
        Dout = out_ref.shape[-1]
        tail_w = Dout - 2 * H

        def mm(a, b):
            return jnp.dot(a.astype(cdt), b.astype(cdt), preferred_element_type=f32)

        def mmT(a, b):  # a^T @ b, contracting axis 0 of both (no materialized transpose)
            return jax.lax.dot_general(a.astype(cdt), b.astype(cdt),
                                       (((0,), (0,)), ((), ())),
                                       preferred_element_type=f32)

        eye_k = (jax.lax.broadcasted_iota(jnp.int32, (K, K), 0)
                 == jax.lax.broadcasted_iota(jnp.int32, (K, K), 1))
        lane_tail = jax.lax.broadcasted_iota(jnp.int32, (1, tail_w), 1)

        # Weights: matmul operands cast to the compute dtype once; biases stay f32.
        w01 = w01_ref[...].astype(cdt); b01 = b01_ref[...]
        w12 = w12_ref[...].astype(cdt); b12 = b12_ref[...]
        wa = wa_ref[...].astype(cdt); wb = wb_ref[...].astype(cdt); bjk = bjk_ref[...]
        qw0 = qw0_ref[...].astype(cdt); qb0 = qb0_ref[...]
        qw1 = qw1_ref[...].astype(cdt); qb1 = qb1_ref[...]
        qwa = qwa_ref[...].astype(cdt); qwb = qwb_ref[...].astype(cdt); qbl = qbl_ref[...]

        @pl.loop(0, bt)  # fori over graphs in the tile (bounds liveness to one graph)
        def _graph(g):
            x = x_ref[g]                                   # (N, Fin) f32
            adj_c = adj_ref[g].astype(cdt)                 # single hoisted cast of (N,N)
            st = st_ref[g]                                 # (N, 4) f32 (precomputed in wrapper)
            dis = st[:, 0:1]                               # deg(A with unit diag)^-1/2, clamped
            self_loop = st[:, 1:2]                         # 1 - diag(A)
            d_flat = st[:, 2:3]                            # raw rowsum(A)
            m = st[:, 3:4]                                 # node mask

            def prop(h):  # D^-1/2 (A with unit diag) D^-1/2 @ h, folded into row scalings
                hs = dis * h
                return dis * (mm(adj_c, hs) + self_loop * hs)

            # Shared A_n @ x; conv_in + pool blocks lane-fused ([conv | pool] packing).
            ax = prop(x)                                                     # (N, Fin)
            hg0 = jnp.maximum(mm(ax, w01) + b01, 0.0) * m                    # (N, 2H)
            hg1 = jnp.maximum(prop(mm(hg0, w12)) + b12, 0.0) * m             # (N, 2H), ONE prop
            jk = jnp.maximum(mm(hg0, wa) + mm(hg1, wb) + bjk, 0.0) * m       # (N, H+K)
            x1 = jk[:, :H]                                                   # conv_in output
            s_logits = jk[:, H:]                                             # pool logits
            p0 = jnp.sum(x1, axis=0, keepdims=True)                          # (1, H) 'add' pool

            # ---- dense_mincut_pool
            smax = jnp.max(s_logits, axis=-1, keepdims=True)
            es = jnp.exp(s_logits - smax)
            s = (es / jnp.sum(es, axis=-1, keepdims=True)) * m               # (N, K)

            x2 = mmT(s, x1)                                                  # (K, H) = S^T X
            as_ = mm(adj_c, s)                                               # (N, K) = A S
            coarse = mmT(s, as_)                                             # (K, K) = S^T A S
            ss = mmT(s, s)                                                   # (K, K) = S^T S

            num = jnp.sum(as_ * s, keepdims=True)                            # trace(S^T A S)
            den = jnp.sum(d_flat * s * s, keepdims=True)                     # trace(S^T D S)
            inv_fro = jax.lax.rsqrt(jnp.sum(ss * ss, keepdims=True))         # EUP rsqrt
            diff = ss * inv_fro - jnp.where(eye_k, 1.0 / math.sqrt(float(K)), 0.0)
            ort = jnp.sqrt(jnp.sum(diff * diff, keepdims=True))              # (1, 1)

            # Coarse adjacency: zero diag + symmetric normalization folded into row scalings.
            C = jnp.where(eye_k, 0.0, coarse)                                # (K, K)
            c_deg = jnp.sum(C, axis=-1, keepdims=True)                       # (K, 1)
            inv_dc = 1.0 / (jnp.sqrt(c_deg) + 1e-15)                         # (K, 1)
            deg2 = inv_dc * mm(C, inv_dc) + 1.0                              # rowsum(adj2) + 1
            dis2 = jax.lax.rsqrt(jnp.maximum(deg2, 1.0))

            def prop2(h):  # normalized (adj2 + I) propagation, adj2 = Dc^-1/2 C Dc^-1/2
                hs = dis2 * h
                return dis2 * (inv_dc * mm(C, inv_dc * hs) + hs)

            # ---- block-1 on the coarsened graph (mask = None), split 'cat'-Linear weights
            u0 = jnp.maximum(prop2(mm(x2, qw0)) + qb0, 0.0)
            u1 = jnp.maximum(prop2(mm(u0, qw1)) + qb1, 0.0)
            x3 = jnp.maximum(mm(u0, qwa) + mm(u1, qwb) + qbl, 0.0)
            p1 = jnp.sum(x3, axis=0, keepdims=True)                          # (1, H)

            # ---- packed output row [p0 | p1 | num den ort | 0 pad], lane-slice stores
            tail = (jnp.where(lane_tail == 0, num, 0.0)
                    + jnp.where(lane_tail == 1, den, 0.0)
                    + jnp.where(lane_tail == 2, ort, 0.0))
            out_ref[g, :, 0:H] = p0
            out_ref[g, :, H:2 * H] = p1
            out_ref[g, :, 2 * H:] = tail

    return kernel


def _block_diag(a, b):
    f32 = jnp.float32
    za = jnp.zeros((a.shape[0], b.shape[1]), f32)
    zb = jnp.zeros((b.shape[0], a.shape[1]), f32)
    return jnp.concatenate([jnp.concatenate([a, za], axis=1),
                            jnp.concatenate([zb, b], axis=1)], axis=0)


def fused_blocks_mincut(x, adj, mask, params, *, batch_tile=None,
                        adj_dtype=jnp.bfloat16, mxu_dtype=None):
    """Runs conv_in + pool block + dense_mincut_pool + block1 fused; returns (B, Dout)
    packed rows: [p0 (H) | p1 (H) | mincut_num | mincut_den | ort | zero pad]."""
    f32 = jnp.float32
    B, N, Fin = x.shape
    w0, b0, w1, b1, wl, bl = params["conv_in"]
    pw0, pb0, pw1, pb1, pwl, pbl = params["pool0"]
    qw0, qb0, qw1, qb1, qwl, qbl = params["block1"]
    H = w0.shape[1]
    K = pwl.shape[1]
    Dout = ((2 * H + 3 + 127) // 128) * 128
    cdt = f32 if mxu_dtype is None else mxu_dtype

    x = x.astype(f32)
    adj_f = adj.astype(f32)

    # Per-node scalars (f32, exact): [dis, self_loop, d_flat, mask].  Removes the in-kernel
    # (N,N) eye mask, diag extraction and degree reductions; folds the mask DMA in too.
    d_flat = jnp.sum(adj_f, axis=-1, keepdims=True)
    diag_a = jnp.diagonal(adj_f, axis1=1, axis2=2)[..., None]
    self_loop = 1.0 - diag_a
    dis = jax.lax.rsqrt(jnp.maximum(d_flat + self_loop, 1.0))
    stats = jnp.concatenate([dis, self_loop, d_flat,
                             mask.reshape(B, N, 1).astype(f32)], axis=-1)

    # Narrow adjacency for HBM/VMEM traffic (exact for a {0,1} adjacency).
    adj_in = adj_f.astype(adj_dtype)

    # conv_in / pool-block lane fusion + split 'cat'-Linear weights (built once in XLA).
    w01 = jnp.concatenate([w0, pw0], axis=1)                       # (Fin, 2H)
    b01 = jnp.concatenate([b0, pb0]).reshape(1, -1)
    w12 = _block_diag(w1, pw1)                                     # (2H, 2H)
    b12 = jnp.concatenate([b1, pb1]).reshape(1, -1)
    wa = _block_diag(wl[:H], pwl[:H])                              # (2H, H+K)
    wb = _block_diag(wl[H:], pwl[H:])                              # (2H, H+K)
    bjk = jnp.concatenate([bl, pbl]).reshape(1, -1)
    weight_args = [w01, b01, w12, b12, wa, wb, bjk,
                   qw0, qb0.reshape(1, -1), qw1, qb1.reshape(1, -1),
                   qwl[:H], qwl[H:], qbl.reshape(1, -1)]
    weight_args = [w.astype(f32) for w in weight_args]

    # VMEM-aware batch tile + vmem limit (v7x: 64 MiB/TC, v5e/v6e: 128 MiB).
    adj_bytes = jnp.dtype(adj_dtype).itemsize
    cdt_bytes = jnp.dtype(cdt).itemsize
    w_bytes = sum(int(w.size) for w in weight_args) * 4
    io_per_graph = N * N * adj_bytes + N * (Fin + 4) * 4 + Dout * 4        # double-buffered
    tmp_per_graph = ((N * N * cdt_bytes if jnp.dtype(cdt) != jnp.dtype(adj_dtype) else 0)
                     + N * (Fin + 6 * H + 3 * K + 16) * 4
                     + (8 * K * K + 4 * K * H) * 4)
    vmem_cap = _vmem_capacity_bytes()

    def footprint(btc):
        return w_bytes + 2 * btc * io_per_graph + tmp_per_graph

    if batch_tile is not None and B % batch_tile == 0:
        bt = batch_tile
    else:
        bt = 1
        for cand in range(1, min(8, B) + 1):
            if B % cand:
                continue
            if B >= 2 and B // cand < 2:
                continue               # keep >= 2 grid steps when possible (v7x: 2 TCs/chip)
            if footprint(cand) <= int(0.7 * vmem_cap):
                bt = cand
    grid = (B // bt,)

    need = footprint(bt) + (4 << 20)
    vmem_limit = int(min(max(need, 32 << 20), int(0.9 * vmem_cap)))
    vmem_limit = max(vmem_limit, need)

    out = pl.pallas_call(
        _make_fused_kernel(bt, cdt),
        grid=grid,
        in_specs=[pl.BlockSpec((bt, N, Fin), lambda b: (b, 0, 0)),
                  pl.BlockSpec((bt, N, N), lambda b: (b, 0, 0)),
                  pl.BlockSpec((bt, N, 4), lambda b: (b, 0, 0))]
                 + [pl.BlockSpec(w.shape, lambda b: (0, 0)) for w in weight_args],
        out_specs=pl.BlockSpec((bt, 1, Dout), lambda b: (b, 0, 0)),
        out_shape=jax.ShapeDtypeStruct((B, 1, Dout), jnp.float32),
        compiler_params=pltpu.CompilerParams(
            dimension_semantics=("parallel",),
            vmem_limit_bytes=vmem_limit),
    )(x, adj_in, stats, *weight_args)
    return out[:, 0, :]


# ----------------------------------------------------------------------------
# Readout head in plain JAX/XLA (tiny: B x 2H -> C).  BatchNorm uses batch stats.
# ----------------------------------------------------------------------------
def readout_head(xcat, bnw, bnb, w1, b1, w2, b2):
    mean = jnp.mean(xcat, axis=0, keepdims=True)
    var = jnp.mean((xcat - mean) ** 2, axis=0, keepdims=True)      # biased batch variance
    xn = (xcat - mean) * jax.lax.rsqrt(var + 1e-5) * bnw + bnb
    h = jnp.maximum(xn @ w1 + b1, 0.0)
    # TODO(synk): F.dropout omitted (eval-mode identity)
    logits = h @ w2 + b2
    return jax.nn.softmax(logits, axis=-1)


def mincutpool_forward(x, adj, mask, params, *, batch_tile=None,
                       adj_dtype=jnp.bfloat16, mxu_dtype=None):
    H = params["conv_in"][0].shape[1]
    packed = fused_blocks_mincut(x, adj, mask, params, batch_tile=batch_tile,
                                 adj_dtype=adj_dtype, mxu_dtype=mxu_dtype)
    xcat = packed[:, :2 * H]                       # [p0 | p1] (already concatenated in-kernel)
    num = packed[:, 2 * H]
    den = packed[:, 2 * H + 1]
    ort = packed[:, 2 * H + 2]
    mincut_loss = jnp.mean(-(num / den))
    ort_loss = jnp.mean(ort)
    probs = readout_head(xcat, *params["head"])
    return probs, mincut_loss, ort_loss


# ----------------------------------------------------------------------------
# Pure JAX/XLA reference of the same forward (validation only).
# ----------------------------------------------------------------------------
def _reference_forward(x, adj, mask, params):
    f32 = jnp.float32
    m = mask[..., None].astype(f32)

    def dense_gcn(h, a, w, b, msk):
        n = a.shape[-1]
        eye = jnp.eye(n, dtype=f32)[None]
        a_sl = jnp.where(eye > 0, 1.0, a)
        deg = jnp.sum(a_sl, axis=-1, keepdims=True)
        dis = jax.lax.rsqrt(jnp.maximum(deg, 1.0))
        a_n = dis * a_sl * jnp.swapaxes(dis, -1, -2)
        out = jnp.einsum("bij,bjf->bif", a_n, h @ w) + b
        return out * msk if msk is not None else out

    def block(h, a, msk, prm):
        w0, b0, w1, b1, wl, bl = prm
        h0 = jax.nn.relu(dense_gcn(h, a, w0, b0, msk))
        h1 = jax.nn.relu(dense_gcn(h0, a, w1, b1, msk))
        o = jax.nn.relu(jnp.concatenate([h0, h1], -1) @ wl + bl)
        return o * msk if msk is not None else o

    x1 = block(x, adj, m, params["conv_in"])
    p0 = jnp.sum(x1, axis=1)
    s_log = block(x, adj, m, params["pool0"])

    s = jax.nn.softmax(s_log, axis=-1) * m
    k = s.shape[-1]
    x2 = jnp.einsum("bnk,bnh->bkh", s, x1 * m)
    coarse = jnp.einsum("bnk,bnm,bml->bkl", s, adj, s)
    num = jnp.trace(coarse, axis1=-2, axis2=-1)
    d_flat = jnp.sum(adj, axis=-1)
    den = jnp.einsum("bn,bnk,bnk->b", d_flat, s, s)
    ss = jnp.einsum("bnk,bnl->bkl", s, s)
    inv_fro = jax.lax.rsqrt(jnp.sum(ss * ss, axis=(-1, -2), keepdims=True))
    eye_k = jnp.eye(k, dtype=f32)[None]
    diff = ss * inv_fro - eye_k / jnp.sqrt(jnp.float32(k))
    ort = jnp.sqrt(jnp.sum(diff * diff, axis=(-1, -2)))
    mincut_loss = jnp.mean(-(num / den))
    ort_loss = jnp.mean(ort)

    coarse = coarse * (1.0 - eye_k)
    d = jnp.sqrt(jnp.sum(coarse, axis=-1)) + 1e-15
    adj2 = coarse / d[:, None, :] / d[:, :, None]

    x3 = block(x2, adj2, None, params["block1"])
    p1 = jnp.sum(x3, axis=1)

    probs = readout_head(jnp.concatenate([p0, p1], -1), *params["head"])
    aux = {"p0": p0, "p1": p1, "num": num, "den": den, "ort": ort}
    return probs, mincut_loss, ort_loss, aux


# ----------------------------------------------------------------------------
# Deterministic parameter init + example run.
# ----------------------------------------------------------------------------
def _glorot(key, shape):
    fi, fo = shape
    lim = math.sqrt(6.0 / (fi + fo))
    return jax.random.uniform(key, shape, jnp.float32, -lim, lim)


if __name__ == "__main__":
    B, N, F, H, C = 2, 16, 4, 32, 3
    K = math.ceil(0.25 * N)                                        # ratio=0.25 -> 4 clusters

    key = jax.random.PRNGKey(0)
    ks = list(jax.random.split(key, 16))

    # inputs: dense-batched graphs (graph 0 has 16 nodes, graph 1 has 12)
    num_nodes = jnp.array([16, 12])
    mask = (jnp.arange(N)[None, :] < num_nodes[:, None]).astype(jnp.float32)
    x = jax.random.normal(ks[0], (B, N, F), jnp.float32) * mask[:, :, None]
    a = jax.random.bernoulli(ks[1], 0.3, (B, N, N)).astype(jnp.float32)
    adj = jnp.clip(a + jnp.transpose(a, (0, 2, 1)), 0.0, 1.0)
    adj = adj * (1.0 - jnp.eye(N))[None]
    adj = adj * mask[:, :, None] * mask[:, None, :]

    params = {
        "conv_in": (_glorot(ks[2], (F, H)), jnp.zeros(H, jnp.float32),
                    _glorot(ks[3], (H, H)), jnp.zeros(H, jnp.float32),
                    _glorot(ks[4], (2 * H, H)), jnp.zeros(H, jnp.float32)),
        "pool0":   (_glorot(ks[5], (F, H)), jnp.zeros(H, jnp.float32),
                    _glorot(ks[6], (H, H)), jnp.zeros(H, jnp.float32),
                    _glorot(ks[7], (2 * H, K)), jnp.zeros(K, jnp.float32)),
        "block1":  (_glorot(ks[8], (H, H)), jnp.zeros(H, jnp.float32),
                    _glorot(ks[9], (H, H)), jnp.zeros(H, jnp.float32),
                    _glorot(ks[10], (2 * H, H)), jnp.zeros(H, jnp.float32)),
        "head":    (jnp.ones(2 * H, jnp.float32), jnp.zeros(2 * H, jnp.float32),  # BN w/b
                    _glorot(ks[11], (2 * H, H)), jnp.zeros(H, jnp.float32),
                    _glorot(ks[12], (H, C)), jnp.zeros(C, jnp.float32)),
    }

    probs, mincut_loss, ort_loss = jax.jit(mincutpool_forward)(x, adj, mask, params)
    jax.block_until_ready((probs, mincut_loss, ort_loss))

    packed = jax.jit(fused_blocks_mincut)(x, adj, mask, params)
    packed.block_until_ready()

    with jax.default_matmul_precision("highest"):
        probs_r, mc_r, ort_r, aux = jax.jit(_reference_forward)(x, adj, mask, params)

    def close(a, b, rtol=5e-2, atol=5e-2):
        return bool(jnp.allclose(a, b, rtol=rtol, atol=atol))

    assert probs.shape == (B, C)
    assert bool(jnp.all(jnp.isfinite(probs)))
    assert bool(jnp.allclose(jnp.sum(probs, axis=-1), 1.0, atol=1e-5))
    assert bool(jnp.isfinite(mincut_loss)) and bool(jnp.isfinite(ort_loss))
    # validate the fused kernel's packed outputs against the XLA reference
    assert close(packed[:, :H], aux["p0"])
    assert close(packed[:, H:2 * H], aux["p1"])
    assert close(packed[:, 2 * H], aux["num"])
    assert close(packed[:, 2 * H + 1], aux["den"])
    assert close(packed[:, 2 * H + 2], aux["ort"])
    assert close(mincut_loss, mc_r) and close(ort_loss, ort_r)
    assert close(probs, probs_r)
    print("KERNEL_OK")
</pallas_src>

<mosaic_0001>
module attributes {stable_mosaic.version = 11 : i64} {
  func.func @kernel(%arg0: i32, %arg1: memref<1x16x4xf32, #tpu.memory_space<vmem>>, %arg2: memref<1x16x16xbf16, #tpu.memory_space<vmem>>, %arg3: memref<1x16x4xf32, #tpu.memory_space<vmem>>, %arg4: memref<4x64xf32, #tpu.memory_space<vmem>>, %arg5: memref<1x64xf32, #tpu.memory_space<vmem>>, %arg6: memref<64x64xf32, #tpu.memory_space<vmem>>, %arg7: memref<1x64xf32, #tpu.memory_space<vmem>>, %arg8: memref<64x36xf32, #tpu.memory_space<vmem>>, %arg9: memref<64x36xf32, #tpu.memory_space<vmem>>, %arg10: memref<1x36xf32, #tpu.memory_space<vmem>>, %arg11: memref<32x32xf32, #tpu.memory_space<vmem>>, %arg12: memref<1x32xf32, #tpu.memory_space<vmem>>, %arg13: memref<32x32xf32, #tpu.memory_space<vmem>>, %arg14: memref<1x32xf32, #tpu.memory_space<vmem>>, %arg15: memref<32x32xf32, #tpu.memory_space<vmem>>, %arg16: memref<32x32xf32, #tpu.memory_space<vmem>>, %arg17: memref<1x32xf32, #tpu.memory_space<vmem>>, %arg18: memref<1x1x128xf32, #tpu.memory_space<vmem>>) attributes {dimension_semantics = [#tpu.dimension_semantics<parallel>], iteration_bounds = array<i64: 2>, scalar_prefetch = 0 : i64, scratch_operands = 0 : i64, tpu.core_type = #tpu.core_type<tc>, window_params = [{transform_indices = @transform_0, window_bounds = array<i64: 1, 16, 4>}, {transform_indices = @transform_1, window_bounds = array<i64: 1, 16, 16>}, {transform_indices = @transform_2, window_bounds = array<i64: 1, 16, 4>}, {pipeline_mode = #tpu.pipeline_mode<synchronous>, transform_indices = @transform_3, window_bounds = array<i64: 4, 64>}, {pipeline_mode = #tpu.pipeline_mode<synchronous>, transform_indices = @transform_4, window_bounds = array<i64: 1, 64>}, {pipeline_mode = #tpu.pipeline_mode<synchronous>, transform_indices = @transform_5, window_bounds = array<i64: 64, 64>}, {pipeline_mode = #tpu.pipeline_mode<synchronous>, transform_indices = @transform_6, window_bounds = array<i64: 1, 64>}, {pipeline_mode = #tpu.pipeline_mode<synchronous>, transform_indices = @transform_7, window_bounds = array<i64: 64, 36>}, {pipeline_mode = #tpu.pipeline_mode<synchronous>, transform_indices = @transform_8, window_bounds = array<i64: 64, 36>}, {pipeline_mode = #tpu.pipeline_mode<synchronous>, transform_indices = @transform_9, window_bounds = array<i64: 1, 36>}, {pipeline_mode = #tpu.pipeline_mode<synchronous>, transform_indices = @transform_10, window_bounds = array<i64: 32, 32>}, {pipeline_mode = #tpu.pipeline_mode<synchronous>, transform_indices = @transform_11, window_bounds = array<i64: 1, 32>}, {pipeline_mode = #tpu.pipeline_mode<synchronous>, transform_indices = @transform_12, window_bounds = array<i64: 32, 32>}, {pipeline_mode = #tpu.pipeline_mode<synchronous>, transform_indices = @transform_13, window_bounds = array<i64: 1, 32>}, {pipeline_mode = #tpu.pipeline_mode<synchronous>, transform_indices = @transform_14, window_bounds = array<i64: 32, 32>}, {pipeline_mode = #tpu.pipeline_mode<synchronous>, transform_indices = @transform_15, window_bounds = array<i64: 32, 32>}, {pipeline_mode = #tpu.pipeline_mode<synchronous>, transform_indices = @transform_16, window_bounds = array<i64: 1, 32>}, {transform_indices = @transform_17, window_bounds = array<i64: 1, 1, 128>}]} {
    %0 = tpu.iota {dimensions = array<i32: 0>} : vector<4x4xi32>
    %1 = tpu.iota {dimensions = array<i32: 1>} : vector<4x4xi32>
    %2 = arith.cmpi eq, %0, %1 : vector<4x4xi32>
    %3 = tpu.iota {dimensions = array<i32: 1>} : vector<1x64xi32>
    %c0 = arith.constant 0 : index
    %c0_0 = arith.constant 0 : index
    %4 = vector.load %arg4[%c0, %c0_0] : memref<4x64xf32, #tpu.memory_space<vmem>>, vector<4x64xf32>
    %c0_1 = arith.constant 0 : index
    %c0_2 = arith.constant 0 : index
    %5 = vector.load %arg5[%c0_1, %c0_2] : memref<1x64xf32, #tpu.memory_space<vmem>>, vector<1x64xf32>
    %c0_3 = arith.constant 0 : index
    %c0_4 = arith.constant 0 : index
    %6 = vector.load %arg6[%c0_3, %c0_4] : memref<64x64xf32, #tpu.memory_space<vmem>>, vector<64x64xf32>
    %c0_5 = arith.constant 0 : index
    %c0_6 = arith.constant 0 : index
    %7 = vector.load %arg7[%c0_5, %c0_6] : memref<1x64xf32, #tpu.memory_space<vmem>>, vector<1x64xf32>
    %c0_7 = arith.constant 0 : index
    %c0_8 = arith.constant 0 : index
    %8 = vector.load %arg8[%c0_7, %c0_8] : memref<64x36xf32, #tpu.memory_space<vmem>>, vector<64x36xf32>
    %c0_9 = arith.constant 0 : index
    %c0_10 = arith.constant 0 : index
    %9 = vector.load %arg9[%c0_9, %c0_10] : memref<64x36xf32, #tpu.memory_space<vmem>>, vector<64x36xf32>
    %c0_11 = arith.constant 0 : index
    %c0_12 = arith.constant 0 : index
    %10 = vector.load %arg10[%c0_11, %c0_12] : memref<1x36xf32, #tpu.memory_space<vmem>>, vector<1x36xf32>
    %c0_13 = arith.constant 0 : index
    %c0_14 = arith.constant 0 : index
    %11 = vector.load %arg11[%c0_13, %c0_14] : memref<32x32xf32, #tpu.memory_space<vmem>>, vector<32x32xf32>
    %c0_15 = arith.constant 0 : index
    %c0_16 = arith.constant 0 : index
    %12 = vector.load %arg12[%c0_15, %c0_16] : memref<1x32xf32, #tpu.memory_space<vmem>>, vector<1x32xf32>
    %c0_17 = arith.constant 0 : index
    %c0_18 = arith.constant 0 : index
    %13 = vector.load %arg13[%c0_17, %c0_18] : memref<32x32xf32, #tpu.memory_space<vmem>>, vector<32x32xf32>
    %c0_19 = arith.constant 0 : index
    %c0_20 = arith.constant 0 : index
    %14 = vector.load %arg14[%c0_19, %c0_20] : memref<1x32xf32, #tpu.memory_space<vmem>>, vector<1x32xf32>
    %c0_21 = arith.constant 0 : index
    %c0_22 = arith.constant 0 : index
    %15 = vector.load %arg15[%c0_21, %c0_22] : memref<32x32xf32, #tpu.memory_space<vmem>>, vector<32x32xf32>
    %c0_23 = arith.constant 0 : index
    %c0_24 = arith.constant 0 : index
    %16 = vector.load %arg16[%c0_23, %c0_24] : memref<32x32xf32, #tpu.memory_space<vmem>>, vector<32x32xf32>
    %c0_25 = arith.constant 0 : index
    %c0_26 = arith.constant 0 : index
    %17 = vector.load %arg17[%c0_25, %c0_26] : memref<1x32xf32, #tpu.memory_space<vmem>>, vector<1x32xf32>
    %c0_i32 = arith.constant 0 : i32
    %c1_i32 = arith.constant 1 : i32
    %18 = arith.muli %c0_i32, %c1_i32 : i32
    %c0_i32_27 = arith.constant 0 : i32
    %19 = arith.addi %c0_i32_27, %18 : i32
    %20 = arith.index_cast %19 : i32 to index
    %c0_28 = arith.constant 0 : index
    %c0_29 = arith.constant 0 : index
    %21 = vector.load %arg1[%20, %c0_28, %c0_29] : memref<1x16x4xf32, #tpu.memory_space<vmem>>, vector<1x16x4xf32>
    %22 = vector.shape_cast %21 : vector<1x16x4xf32> to vector<16x4xf32>
    %23 = arith.index_cast %19 : i32 to index
    %c0_30 = arith.constant 0 : index
    %c0_31 = arith.constant 0 : index
    %24 = vector.load %arg2[%23, %c0_30, %c0_31] : memref<1x16x16xbf16, #tpu.memory_space<vmem>>, vector<1x16x16xbf16>
    %25 = vector.shape_cast %24 : vector<1x16x16xbf16> to vector<16x16xbf16>
    %26 = arith.extf %25 : vector<16x16xbf16> to vector<16x16xf32>
    %27 = arith.index_cast %19 : i32 to index
    %c0_32 = arith.constant 0 : index
    %c0_33 = arith.constant 0 : index
    %28 = vector.load %arg3[%27, %c0_32, %c0_33] : memref<1x16x4xf32, #tpu.memory_space<vmem>>, vector<1x16x4xf32>
    %29 = vector.shape_cast %28 : vector<1x16x4xf32> to vector<16x4xf32>
    %30 = vector.extract_strided_slice %29 {offsets = [0, 0], sizes = [16, 1], strides = [1, 1]} : vector<16x4xf32> to vector<16x1xf32>
    %31 = vector.extract_strided_slice %29 {offsets = [0, 1], sizes = [16, 1], strides = [1, 1]} : vector<16x4xf32> to vector<16x1xf32>
    %32 = vector.extract_strided_slice %29 {offsets = [0, 2], sizes = [16, 1], strides = [1, 1]} : vector<16x4xf32> to vector<16x1xf32>
    %33 = vector.extract_strided_slice %29 {offsets = [0, 3], sizes = [16, 1], strides = [1, 1]} : vector<16x4xf32> to vector<16x1xf32>
    %34 = vector.broadcast %30 : vector<16x1xf32> to vector<16x4xf32>
    %35 = arith.mulf %34, %22 : vector<16x4xf32>
    %cst = arith.constant dense<0.000000e+00> : vector<16x4xf32>
    %36 = tpu.matmul %26, %35, %cst {dimension_numbers = #tpu.dot_dimension_numbers<[1], [0], [0], [1], [0, 0, 1, 1], [], []>} : vector<16x16xf32>, vector<16x4xf32>, vector<16x4xf32> -> vector<16x4xf32>
    %37 = vector.broadcast %31 : vector<16x1xf32> to vector<16x4xf32>
    %38 = arith.mulf %37, %35 : vector<16x4xf32>
    %39 = arith.addf %36, %38 : vector<16x4xf32>
    %40 = vector.broadcast %30 : vector<16x1xf32> to vector<16x4xf32>
    %41 = arith.mulf %40, %39 : vector<16x4xf32>
    %cst_34 = arith.constant dense<0.000000e+00> : vector<16x64xf32>
    %42 = tpu.matmul %41, %4, %cst_34 {dimension_numbers = #tpu.dot_dimension_numbers<[1], [0], [0], [1], [0, 0, 1, 1], [], []>} : vector<16x4xf32>, vector<4x64xf32>, vector<16x64xf32> -> vector<16x64xf32>
    %43 = vector.broadcast %5 : vector<1x64xf32> to vector<16x64xf32>
    %44 = arith.addf %42, %43 : vector<16x64xf32>
    %cst_35 = arith.constant 0.000000e+00 : f32
    %45 = vector.broadcast %cst_35 : f32 to vector<16x64xf32>
    %46 = arith.maximumf %44, %45 : vector<16x64xf32>
    %47 = vector.broadcast %33 : vector<16x1xf32> to vector<16x64xf32>
    %48 = arith.mulf %46, %47 : vector<16x64xf32>
    %cst_36 = arith.constant dense<0.000000e+00> : vector<16x64xf32>
    %49 = tpu.matmul %48, %6, %cst_36 {dimension_numbers = #tpu.dot_dimension_numbers<[1], [0], [0], [1], [0, 0, 1, 1], [], []>} : vector<16x64xf32>, vector<64x64xf32>, vector<16x64xf32> -> vector<16x64xf32>
    %50 = vector.broadcast %30 : vector<16x1xf32> to vector<16x64xf32>
    %51 = arith.mulf %50, %49 : vector<16x64xf32>
    %cst_37 = arith.constant dense<0.000000e+00> : vector<16x64xf32>
    %52 = tpu.matmul %26, %51, %cst_37 {dimension_numbers = #tpu.dot_dimension_numbers<[1], [0], [0], [1], [0, 0, 1, 1], [], []>} : vector<16x16xf32>, vector<16x64xf32>, vector<16x64xf32> -> vector<16x64xf32>
    %53 = vector.broadcast %31 : vector<16x1xf32> to vector<16x64xf32>
    %54 = arith.mulf %53, %51 : vector<16x64xf32>
    %55 = arith.addf %52, %54 : vector<16x64xf32>
    %56 = vector.broadcast %30 : vector<16x1xf32> to vector<16x64xf32>
    %57 = arith.mulf %56, %55 : vector<16x64xf32>
    %58 = vector.broadcast %7 : vector<1x64xf32> to vector<16x64xf32>
    %59 = arith.addf %57, %58 : vector<16x64xf32>
    %cst_38 = arith.constant 0.000000e+00 : f32
    %60 = vector.broadcast %cst_38 : f32 to vector<16x64xf32>
    %61 = arith.maximumf %59, %60 : vector<16x64xf32>
    %62 = vector.broadcast %33 : vector<16x1xf32> to vector<16x64xf32>
    %63 = arith.mulf %61, %62 : vector<16x64xf32>
    %cst_39 = arith.constant dense<0.000000e+00> : vector<16x36xf32>
    %64 = tpu.matmul %48, %8, %cst_39 {dimension_numbers = #tpu.dot_dimension_numbers<[1], [0], [0], [1], [0, 0, 1, 1], [], []>} : vector<16x64xf32>, vector<64x36xf32>, vector<16x36xf32> -> vector<16x36xf32>
    %cst_40 = arith.constant dense<0.000000e+00> : vector<16x36xf32>
    %65 = tpu.matmul %63, %9, %cst_40 {dimension_numbers = #tpu.dot_dimension_numbers<[1], [0], [0], [1], [0, 0, 1, 1], [], []>} : vector<16x64xf32>, vector<64x36xf32>, vector<16x36xf32> -> vector<16x36xf32>
    %66 = arith.addf %64, %65 : vector<16x36xf32>
    %67 = vector.broadcast %10 : vector<1x36xf32> to vector<16x36xf32>
    %68 = arith.addf %66, %67 : vector<16x36xf32>
    %cst_41 = arith.constant 0.000000e+00 : f32
    %69 = vector.broadcast %cst_41 : f32 to vector<16x36xf32>
    %70 = arith.maximumf %68, %69 : vector<16x36xf32>
    %71 = vector.broadcast %33 : vector<16x1xf32> to vector<16x36xf32>
    %72 = arith.mulf %70, %71 : vector<16x36xf32>
    %73 = vector.extract_strided_slice %72 {offsets = [0, 0], sizes = [16, 32], strides = [1, 1]} : vector<16x36xf32> to vector<16x32xf32>
    %74 = vector.extract_strided_slice %72 {offsets = [0, 32], sizes = [16, 4], strides = [1, 1]} : vector<16x36xf32> to vector<16x4xf32>
    %cst_42 = arith.constant dense<0.000000e+00> : vector<32xf32>
    %75 = vector.multi_reduction <add>, %73, %cst_42 [0] : vector<16x32xf32> to vector<32xf32>
    %76 = vector.shape_cast %75 : vector<32xf32> to vector<1x32xf32>
    %cst_43 = arith.constant dense<0xFF800000> : vector<16xf32>
    %77 = vector.multi_reduction <maximumf>, %74, %cst_43 [1] : vector<16x4xf32> to vector<16xf32>
    %78 = vector.shape_cast %77 : vector<16xf32> to vector<16x1xf32>
    %79 = vector.broadcast %78 : vector<16x1xf32> to vector<16x4xf32>
    %80 = arith.subf %74, %79 : vector<16x4xf32>
    %81 = math.exp %80 : vector<16x4xf32>
    %cst_44 = arith.constant dense<0.000000e+00> : vector<16xf32>
    %82 = vector.multi_reduction <add>, %81, %cst_44 [1] : vector<16x4xf32> to vector<16xf32>
    %83 = vector.shape_cast %82 : vector<16xf32> to vector<16x1xf32>
    %84 = vector.broadcast %83 : vector<16x1xf32> to vector<16x4xf32>
    %85 = arith.divf %81, %84 : vector<16x4xf32>
    %86 = vector.broadcast %33 : vector<16x1xf32> to vector<16x4xf32>
    %87 = arith.mulf %85, %86 : vector<16x4xf32>
    %cst_45 = arith.constant dense<0.000000e+00> : vector<4x32xf32>
    %88 = tpu.matmul %87, %73, %cst_45 {dimension_numbers = #tpu.dot_dimension_numbers<[0], [0], [1], [1], [0, 1, 1, 1], [], []>} : vector<16x4xf32>, vector<16x32xf32>, vector<4x32xf32> -> vector<4x32xf32>
    %cst_46 = arith.constant dense<0.000000e+00> : vector<16x4xf32>
    %89 = tpu.matmul %26, %87, %cst_46 {dimension_numbers = #tpu.dot_dimension_numbers<[1], [0], [0], [1], [0, 0, 1, 1], [], []>} : vector<16x16xf32>, vector<16x4xf32>, vector<16x4xf32> -> vector<16x4xf32>
    %cst_47 = arith.constant dense<0.000000e+00> : vector<4x4xf32>
    %90 = tpu.matmul %87, %89, %cst_47 {dimension_numbers = #tpu.dot_dimension_numbers<[0], [0], [1], [1], [0, 1, 1, 1], [], []>} : vector<16x4xf32>, vector<16x4xf32>, vector<4x4xf32> -> vector<4x4xf32>
    %cst_48 = arith.constant dense<0.000000e+00> : vector<4x4xf32>
    %91 = tpu.matmul %87, %87, %cst_48 {dimension_numbers = #tpu.dot_dimension_numbers<[0], [0], [1], [1], [0, 1, 1, 1], [], []>} : vector<16x4xf32>, vector<16x4xf32>, vector<4x4xf32> -> vector<4x4xf32>
    %92 = arith.mulf %89, %87 : vector<16x4xf32>
    %93 = vector.shape_cast %92 : vector<16x4xf32> to vector<1x16x4xf32>
    %cst_49 = arith.constant dense<0.000000e+00> : vector<1xf32>
    %94 = vector.multi_reduction <add>, %93, %cst_49 [1, 2] : vector<1x16x4xf32> to vector<1xf32>
    %95 = vector.shape_cast %94 : vector<1xf32> to vector<1x1x1xf32>
    %96 = vector.extract %95[0, 0, 0] : f32 from vector<1x1x1xf32>
    %97 = vector.broadcast %96 : f32 to vector<1x1xf32>
    %98 = vector.broadcast %32 : vector<16x1xf32> to vector<16x4xf32>
    %99 = arith.mulf %98, %87 : vector<16x4xf32>
    %100 = arith.mulf %99, %87 : vector<16x4xf32>
    %101 = vector.shape_cast %100 : vector<16x4xf32> to vector<1x16x4xf32>
    %cst_50 = arith.constant dense<0.000000e+00> : vector<1xf32>
    %102 = vector.multi_reduction <add>, %101, %cst_50 [1, 2] : vector<1x16x4xf32> to vector<1xf32>
    %103 = vector.shape_cast %102 : vector<1xf32> to vector<1x1x1xf32>
    %104 = vector.extract %103[0, 0, 0] : f32 from vector<1x1x1xf32>
    %105 = vector.broadcast %104 : f32 to vector<1x1xf32>
    %106 = arith.mulf %91, %91 : vector<4x4xf32>
    %107 = vector.shape_cast %106 : vector<4x4xf32> to vector<1x4x4xf32>
    %cst_51 = arith.constant dense<0.000000e+00> : vector<1xf32>
    %108 = vector.multi_reduction <add>, %107, %cst_51 [1, 2] : vector<1x4x4xf32> to vector<1xf32>
    %109 = vector.shape_cast %108 : vector<1xf32> to vector<1x1x1xf32>
    %110 = vector.extract %109[0, 0, 0] : f32 from vector<1x1x1xf32>
    %111 = vector.broadcast %110 : f32 to vector<1x1xf32>
    %112 = math.rsqrt %111 : vector<1x1xf32>
    %113 = vector.broadcast %112 : vector<1x1xf32> to vector<4x4xf32>
    %114 = arith.mulf %91, %113 : vector<4x4xf32>
    %cst_52 = arith.constant 5.000000e-01 : f32
    %cst_53 = arith.constant 0.000000e+00 : f32
    %115 = vector.broadcast %cst_52 : f32 to vector<4x4xf32>
    %116 = vector.broadcast %cst_53 : f32 to vector<4x4xf32>
    %117 = arith.select %2, %115, %116 : vector<4x4xi1>, vector<4x4xf32>
    %118 = arith.subf %114, %117 : vector<4x4xf32>
    %119 = arith.mulf %118, %118 : vector<4x4xf32>
    %120 = vector.shape_cast %119 : vector<4x4xf32> to vector<1x4x4xf32>
    %cst_54 = arith.constant dense<0.000000e+00> : vector<1xf32>
    %121 = vector.multi_reduction <add>, %120, %cst_54 [1, 2] : vector<1x4x4xf32> to vector<1xf32>
    %122 = vector.shape_cast %121 : vector<1xf32> to vector<1x1x1xf32>
    %123 = vector.extract %122[0, 0, 0] : f32 from vector<1x1x1xf32>
    %124 = vector.broadcast %123 : f32 to vector<1x1xf32>
    %125 = math.sqrt %124 : vector<1x1xf32>
    %cst_55 = arith.constant 0.000000e+00 : f32
    %126 = vector.broadcast %cst_55 : f32 to vector<4x4xf32>
    %127 = arith.select %2, %126, %90 : vector<4x4xi1>, vector<4x4xf32>
    %cst_56 = arith.constant dense<0.000000e+00> : vector<4xf32>
    %128 = vector.multi_reduction <add>, %127, %cst_56 [1] : vector<4x4xf32> to vector<4xf32>
    %129 = vector.shape_cast %128 : vector<4xf32> to vector<4x1xf32>
    %130 = math.sqrt %129 : vector<4x1xf32>
    %cst_57 = arith.constant 1.000000e-15 : f32
    %131 = vector.broadcast %cst_57 : f32 to vector<4x1xf32>
    %132 = arith.addf %130, %131 : vector<4x1xf32>
    %cst_58 = arith.constant 1.000000e+00 : f32
    %133 = vector.broadcast %cst_58 : f32 to vector<4x1xf32>
    %134 = arith.divf %133, %132 : vector<4x1xf32>
    %cst_59 = arith.constant dense<0.000000e+00> : vector<4x1xf32>
    %135 = tpu.matmul %127, %134, %cst_59 {dimension_numbers = #tpu.dot_dimension_numbers<[1], [0], [0], [1], [0, 0, 1, 1], [], []>} : vector<4x4xf32>, vector<4x1xf32>, vector<4x1xf32> -> vector<4x1xf32>
    %136 = arith.mulf %134, %135 : vector<4x1xf32>
    %cst_60 = arith.constant 1.000000e+00 : f32
    %137 = vector.broadcast %cst_60 : f32 to vector<4x1xf32>
    %138 = arith.addf %136, %137 : vector<4x1xf32>
    %cst_61 = arith.constant 1.000000e+00 : f32
    %139 = vector.broadcast %cst_61 : f32 to vector<4x1xf32>
    %140 = arith.maximumf %138, %139 : vector<4x1xf32>
    %141 = math.rsqrt %140 : vector<4x1xf32>
    %cst_62 = arith.constant dense<0.000000e+00> : vector<4x32xf32>
    %142 = tpu.matmul %88, %11, %cst_62 {dimension_numbers = #tpu.dot_dimension_numbers<[1], [0], [0], [1], [0, 0, 1, 1], [], []>} : vector<4x32xf32>, vector<32x32xf32>, vector<4x32xf32> -> vector<4x32xf32>
    %143 = vector.broadcast %141 : vector<4x1xf32> to vector<4x32xf32>
    %144 = arith.mulf %143, %142 : vector<4x32xf32>
    %145 = vector.broadcast %134 : vector<4x1xf32> to vector<4x32xf32>
    %146 = arith.mulf %145, %144 : vector<4x32xf32>
    %cst_63 = arith.constant dense<0.000000e+00> : vector<4x32xf32>
    %147 = tpu.matmul %127, %146, %cst_63 {dimension_numbers = #tpu.dot_dimension_numbers<[1], [0], [0], [1], [0, 0, 1, 1], [], []>} : vector<4x4xf32>, vector<4x32xf32>, vector<4x32xf32> -> vector<4x32xf32>
    %148 = vector.broadcast %134 : vector<4x1xf32> to vector<4x32xf32>
    %149 = arith.mulf %148, %147 : vector<4x32xf32>
    %150 = arith.addf %149, %144 : vector<4x32xf32>
    %151 = vector.broadcast %141 : vector<4x1xf32> to vector<4x32xf32>
    %152 = arith.mulf %151, %150 : vector<4x32xf32>
    %153 = vector.broadcast %12 : vector<1x32xf32> to vector<4x32xf32>
    %154 = arith.addf %152, %153 : vector<4x32xf32>
    %cst_64 = arith.constant 0.000000e+00 : f32
    %155 = vector.broadcast %cst_64 : f32 to vector<4x32xf32>
    %156 = arith.maximumf %154, %155 : vector<4x32xf32>
    %cst_65 = arith.constant dense<0.000000e+00> : vector<4x32xf32>
    %157 = tpu.matmul %156, %13, %cst_65 {dimension_numbers = #tpu.dot_dimension_numbers<[1], [0], [0], [1], [0, 0, 1, 1], [], []>} : vector<4x32xf32>, vector<32x32xf32>, vector<4x32xf32> -> vector<4x32xf32>
    %158 = vector.broadcast %141 : vector<4x1xf32> to vector<4x32xf32>
    %159 = arith.mulf %158, %157 : vector<4x32xf32>
    %160 = vector.broadcast %134 : vector<4x1xf32> to vector<4x32xf32>
    %161 = arith.mulf %160, %159 : vector<4x32xf32>
    %cst_66 = arith.constant dense<0.000000e+00> : vector<4x32xf32>
    %162 = tpu.matmul %127, %161, %cst_66 {dimension_numbers = #tpu.dot_dimension_numbers<[1], [0], [0], [1], [0, 0, 1, 1], [], []>} : vector<4x4xf32>, vector<4x32xf32>, vector<4x32xf32> -> vector<4x32xf32>
    %163 = vector.broadcast %134 : vector<4x1xf32> to vector<4x32xf32>
    %164 = arith.mulf %163, %162 : vector<4x32xf32>
    %165 = arith.addf %164, %159 : vector<4x32xf32>
    %166 = vector.broadcast %141 : vector<4x1xf32> to vector<4x32xf32>
    %167 = arith.mulf %166, %165 : vector<4x32xf32>
    %168 = vector.broadcast %14 : vector<1x32xf32> to vector<4x32xf32>
    %169 = arith.addf %167, %168 : vector<4x32xf32>
    %cst_67 = arith.constant 0.000000e+00 : f32
    %170 = vector.broadcast %cst_67 : f32 to vector<4x32xf32>
    %171 = arith.maximumf %169, %170 : vector<4x32xf32>
    %cst_68 = arith.constant dense<0.000000e+00> : vector<4x32xf32>
    %172 = tpu.matmul %156, %15, %cst_68 {dimension_numbers = #tpu.dot_dimension_numbers<[1], [0], [0], [1], [0, 0, 1, 1], [], []>} : vector<4x32xf32>, vector<32x32xf32>, vector<4x32xf32> -> vector<4x32xf32>
    %cst_69 = arith.constant dense<0.000000e+00> : vector<4x32xf32>
    %173 = tpu.matmul %171, %16, %cst_69 {dimension_numbers = #tpu.dot_dimension_numbers<[1], [0], [0], [1], [0, 0, 1, 1], [], []>} : vector<4x32xf32>, vector<32x32xf32>, vector<4x32xf32> -> vector<4x32xf32>
    %174 = arith.addf %172, %173 : vector<4x32xf32>
    %175 = vector.broadcast %17 : vector<1x32xf32> to vector<4x32xf32>
    %176 = arith.addf %174, %175 : vector<4x32xf32>
    %cst_70 = arith.constant 0.000000e+00 : f32
    %177 = vector.broadcast %cst_70 : f32 to vector<4x32xf32>
    %178 = arith.maximumf %176, %177 : vector<4x32xf32>
    %cst_71 = arith.constant dense<0.000000e+00> : vector<32xf32>
    %179 = vector.multi_reduction <add>, %178, %cst_71 [0] : vector<4x32xf32> to vector<32xf32>
    %180 = vector.shape_cast %179 : vector<32xf32> to vector<1x32xf32>
    %c0_i32_72 = arith.constant 0 : i32
    %181 = vector.broadcast %c0_i32_72 : i32 to vector<1x64xi32>
    %182 = arith.cmpi eq, %3, %181 : vector<1x64xi32>
    %cst_73 = arith.constant 0.000000e+00 : f32
    %183 = vector.shape_cast %97 : vector<1x1xf32> to vector<1x1xf32>
    %184 = vector.broadcast %183 : vector<1x1xf32> to vector<1x64xf32>
    %185 = vector.broadcast %cst_73 : f32 to vector<1x64xf32>
    %186 = arith.select %182, %184, %185 : vector<1x64xi1>, vector<1x64xf32>
    %c1_i32_74 = arith.constant 1 : i32
    %187 = vector.broadcast %c1_i32_74 : i32 to vector<1x64xi32>
    %188 = arith.cmpi eq, %3, %187 : vector<1x64xi32>
    %cst_75 = arith.constant 0.000000e+00 : f32
    %189 = vector.shape_cast %105 : vector<1x1xf32> to vector<1x1xf32>
    %190 = vector.broadcast %189 : vector<1x1xf32> to vector<1x64xf32>
    %191 = vector.broadcast %cst_75 : f32 to vector<1x64xf32>
    %192 = arith.select %188, %190, %191 : vector<1x64xi1>, vector<1x64xf32>
    %193 = arith.addf %186, %192 : vector<1x64xf32>
    %c2_i32 = arith.constant 2 : i32
    %194 = vector.broadcast %c2_i32 : i32 to vector<1x64xi32>
    %195 = arith.cmpi eq, %3, %194 : vector<1x64xi32>
    %cst_76 = arith.constant 0.000000e+00 : f32
    %196 = vector.shape_cast %125 : vector<1x1xf32> to vector<1x1xf32>
    %197 = vector.broadcast %196 : vector<1x1xf32> to vector<1x64xf32>
    %198 = vector.broadcast %cst_76 : f32 to vector<1x64xf32>
    %199 = arith.select %195, %197, %198 : vector<1x64xi1>, vector<1x64xf32>
    %200 = arith.addf %193, %199 : vector<1x64xf32>
    %201 = arith.index_cast %19 : i32 to index
    %c0_77 = arith.constant 0 : index
    %c0_78 = arith.constant 0 : index
    %202 = vector.load %arg18[%201, %c0_77, %c0_78] : memref<1x1x128xf32, #tpu.memory_space<vmem>>, vector<1x1x32xf32>
    %203 = vector.shape_cast %202 : vector<1x1x32xf32> to vector<1x32xf32>
    %204 = vector.shape_cast %76 : vector<1x32xf32> to vector<1x1x32xf32>
    tpu.vector_store %arg18[%201, %c0_77, %c0_78], %204 {strides = array<i32>} : memref<1x1x128xf32, #tpu.memory_space<vmem>>, vector<1x1x32xf32>,
    %205 = arith.index_cast %19 : i32 to index
    %c0_79 = arith.constant 0 : index
    %c32 = arith.constant 32 : index
    %206 = vector.load %arg18[%205, %c0_79, %c32] : memref<1x1x128xf32, #tpu.memory_space<vmem>>, vector<1x1x32xf32>
    %207 = vector.shape_cast %206 : vector<1x1x32xf32> to vector<1x32xf32>
    %208 = vector.shape_cast %180 : vector<1x32xf32> to vector<1x1x32xf32>
    tpu.vector_store %arg18[%205, %c0_79, %c32], %208 {strides = array<i32>} : memref<1x1x128xf32, #tpu.memory_space<vmem>>, vector<1x1x32xf32>,
    %209 = arith.index_cast %19 : i32 to index
    %c0_80 = arith.constant 0 : index
    %c64 = arith.constant 64 : index
    %210 = vector.load %arg18[%209, %c0_80, %c64] : memref<1x1x128xf32, #tpu.memory_space<vmem>>, vector<1x1x64xf32>
    %211 = vector.shape_cast %210 : vector<1x1x64xf32> to vector<1x64xf32>
    %212 = vector.shape_cast %200 : vector<1x64xf32> to vector<1x1x64xf32>
    tpu.vector_store %arg18[%209, %c0_80, %c64], %212 {strides = array<i32>} : memref<1x1x128xf32, #tpu.memory_space<vmem>>, vector<1x1x64xf32>,
    %c1_i32_81 = arith.constant 1 : i32
    return
  }
  func.func @transform_0(%arg0: i32) -> (i32, i32, i32) {
    %c0_i32 = arith.constant 0 : i32
    %c0_i32_0 = arith.constant 0 : i32
    %c0_i32_1 = arith.constant 0 : i32
    return %arg0, %c0_i32, %c0_i32_0 : i32, i32, i32
  }
  func.func @transform_1(%arg0: i32) -> (i32, i32, i32) {
    %c0_i32 = arith.constant 0 : i32
    %c0_i32_0 = arith.constant 0 : i32
    %c0_i32_1 = arith.constant 0 : i32
    return %arg0, %c0_i32, %c0_i32_0 : i32, i32, i32
  }
  func.func @transform_2(%arg0: i32) -> (i32, i32, i32) {
    %c0_i32 = arith.constant 0 : i32
    %c0_i32_0 = arith.constant 0 : i32
    %c0_i32_1 = arith.constant 0 : i32
    return %arg0, %c0_i32, %c0_i32_0 : i32, i32, i32
  }
  func.func @transform_3(%arg0: i32) -> (i32, i32) {
    %c0_i32 = arith.constant 0 : i32
    %c0_i32_0 = arith.constant 0 : i32
    %c0_i32_1 = arith.constant 0 : i32
    return %c0_i32, %c0_i32_0 : i32, i32
  }
  func.func @transform_4(%arg0: i32) -> (i32, i32) {
    %c0_i32 = arith.constant 0 : i32
    %c0_i32_0 = arith.constant 0 : i32
    %c0_i32_1 = arith.constant 0 : i32
    return %c0_i32, %c0_i32_0 : i32, i32
  }
  func.func @transform_5(%arg0: i32) -> (i32, i32) {
    %c0_i32 = arith.constant 0 : i32
    %c0_i32_0 = arith.constant 0 : i32
    %c0_i32_1 = arith.constant 0 : i32
    return %c0_i32, %c0_i32_0 : i32, i32
  }
  func.func @transform_6(%arg0: i32) -> (i32, i32) {
    %c0_i32 = arith.constant 0 : i32
    %c0_i32_0 = arith.constant 0 : i32
    %c0_i32_1 = arith.constant 0 : i32
    return %c0_i32, %c0_i32_0 : i32, i32
  }
  func.func @transform_7(%arg0: i32) -> (i32, i32) {
    %c0_i32 = arith.constant 0 : i32
    %c0_i32_0 = arith.constant 0 : i32
    %c0_i32_1 = arith.constant 0 : i32
    return %c0_i32, %c0_i32_0 : i32, i32
  }
  func.func @transform_8(%arg0: i32) -> (i32, i32) {
    %c0_i32 = arith.constant 0 : i32
    %c0_i32_0 = arith.constant 0 : i32
    %c0_i32_1 = arith.constant 0 : i32
    return %c0_i32, %c0_i32_0 : i32, i32
  }
  func.func @transform_9(%arg0: i32) -> (i32, i32) {
    %c0_i32 = arith.constant 0 : i32
    %c0_i32_0 = arith.constant 0 : i32
    %c0_i32_1 = arith.constant 0 : i32
    return %c0_i32, %c0_i32_0 : i32, i32
  }
  func.func @transform_10(%arg0: i32) -> (i32, i32) {
    %c0_i32 = arith.constant 0 : i32
    %c0_i32_0 = arith.constant 0 : i32
    %c0_i32_1 = arith.constant 0 : i32
    return %c0_i32, %c0_i32_0 : i32, i32
  }
  func.func @transform_11(%arg0: i32) -> (i32, i32) {
    %c0_i32 = arith.constant 0 : i32
    %c0_i32_0 = arith.constant 0 : i32
    %c0_i32_1 = arith.constant 0 : i32
    return %c0_i32, %c0_i32_0 : i32, i32
  }
  func.func @transform_12(%arg0: i32) -> (i32, i32) {
    %c0_i32 = arith.constant 0 : i32
    %c0_i32_0 = arith.constant 0 : i32
    %c0_i32_1 = arith.constant 0 : i32
    return %c0_i32, %c0_i32_0 : i32, i32
  }
  func.func @transform_13(%arg0: i32) -> (i32, i32) {
    %c0_i32 = arith.constant 0 : i32
    %c0_i32_0 = arith.constant 0 : i32
    %c0_i32_1 = arith.constant 0 : i32
    return %c0_i32, %c0_i32_0 : i32, i32
  }
  func.func @transform_14(%arg0: i32) -> (i32, i32) {
    %c0_i32 = arith.constant 0 : i32
    %c0_i32_0 = arith.constant 0 : i32
    %c0_i32_1 = arith.constant 0 : i32
    return %c0_i32, %c0_i32_0 : i32, i32
  }
  func.func @transform_15(%arg0: i32) -> (i32, i32) {
    %c0_i32 = arith.constant 0 : i32
    %c0_i32_0 = arith.constant 0 : i32
    %c0_i32_1 = arith.constant 0 : i32
    return %c0_i32, %c0_i32_0 : i32, i32
  }
  func.func @transform_16(%arg0: i32) -> (i32, i32) {
    %c0_i32 = arith.constant 0 : i32
    %c0_i32_0 = arith.constant 0 : i32
    %c0_i32_1 = arith.constant 0 : i32
    return %c0_i32, %c0_i32_0 : i32, i32
  }
  func.func @transform_17(%arg0: i32) -> (i32, i32, i32) {
    %c0_i32 = arith.constant 0 : i32
    %c0_i32_0 = arith.constant 0 : i32
    %c0_i32_1 = arith.constant 0 : i32
    return %arg0, %c0_i32, %c0_i32_0 : i32, i32, i32
  }
}

</mosaic_0001>

<bundles_post_ra>
// kernel: mincutpool_forward.1
= control target key start
LH: loop header
LB: loop body
LE: loop exit
PB: predicated region body
PF: predicated region fallthrough
CT: control target
= control target key end

     0   :  { %s2872_s24 = smov 0   ;;  %s3239_s0 = inlined_call_operand.vmem [shape: f32[2,16,4], index: 0, kind: input, shape index: {}]   ;;  %s3240_s1 = inlined_call_operand.vmem [shape: bf16[2,16,16], index: 1, kind: input, shape index: {}]   ;;  %s3241_s2 = inlined_call_operand.vmem [shape: f32[2,16,4], index: 2, kind: input, shape index: {}]   ;;  %s3242_s3 = inlined_call_operand.vmem [shape: f32[4,64], index: 3, kind: input, shape index: {}]   ;;  %s3243_s4 = inlined_call_operand.vmem [shape: f32[1,64], index: 4, kind: input, shape index: {}]   ;;  %s3244_s5 = inlined_call_operand.vmem [shape: f32[64,64], index: 5, kind: input, shape index: {}]   ;;  %s3245_s6 = inlined_call_operand.vmem [shape: f32[1,64], index: 6, kind: input, shape index: {}]   ;;  %s3246_s7 = inlined_call_operand.vmem [shape: f32[64,36], index: 7, kind: input, shape index: {}]   ;;  %s3247_s8 = inlined_call_operand.vmem [shape: f32[64,36], index: 8, kind: input, shape index: {}]   ;;  %s3248_s9 = inlined_call_operand.vmem [shape: f32[1,36], index: 9, kind: input, shape index: {}]   ;;  %s3249_s10 = inlined_call_operand.vmem [shape: f32[32,32], index: 10, kind: input, shape index: {}]   ;;  %s3250_s11 = inlined_call_operand.vmem [shape: f32[1,32], index: 11, kind: input, shape index: {}]   ;;  %s3251_s12 = inlined_call_operand.vmem [shape: f32[32,32], index: 12, kind: input, shape index: {}]   ;;  %s3252_s13 = inlined_call_operand.vmem [shape: f32[1,32], index: 13, kind: input, shape index: {}]   ;;  %s3253_s14 = inlined_call_operand.vmem [shape: f32[32,32], index: 14, kind: input, shape index: {}]   ;;  %s3254_s15 = inlined_call_operand.vmem [shape: f32[32,32], index: 15, kind: input, shape index: {}]   ;;  %s3255_s16 = inlined_call_operand.vmem [shape: f32[1,32], index: 16, kind: input, shape index: {}]   ;;  %s3256_s17 = inlined_call_operand.vmem [shape: f32[2,1,128], index: 17, kind: output, shape index: {}]  }
   0x1   :  { %3257 = sst [smem:[#allocation2_spill]] %s3239_s0 }
   0x2   :  { %3258 = sst [smem:[#allocation3_spill]] %s3240_s1 }
   0x3 LB: > { %s2322_s25 = sadd.s32 4294967295, %s2770_s24   ;;  %p2326_p0 = scmp.ge.s32.totalorder %s2770_s24, 1  ;;  %s2770_s24 = sphi %s2872_s24, %s27_s24  }
   0x4   : > { %p507_p1 = scmp.lt.s32.totalorder %s2770_s24, 3 }
   0x6   : > { %p508_p2 = pnand %p2326_p0, %p507_p1 }
   0x7   : > { %p567_p3 = scmp.lt.s32.totalorder (!%p508_p2), %s2322_s25, 1  ;;  %v2772_v0 = vmov (!%p508_p2), 0   ;;  %v2773_v1 = vmov (!%p508_p2), 1   ;;  %s3259_s19 = sld [smem:[#allocation3_spill]] (!%p508_p2)  ;;  %vm667_vm0 = vcmask (!%p508_p2), 130048   ;;  %vm764_vm1 = vcmask (!%p508_p2), 1043456  }
   0x8   : > { %511 = sbr.rel (%p508_p2) target bundleno = 3930 (0xf5a), region = 88  ;;  %2740 = vset.pattern.permute.xlu0 (!%p508_p2), %v2772_v0  ;;  %2741 = vset.pattern.permute.xlu1 (!%p508_p2), %v2773_v1  ;;  %s3260_s22 = sld [smem:[#allocation2_spill]] (!%p508_p2)  ;;  %v590_v14 = vld [vmem:[%s3242_s3] sm:$0xf] (!%p508_p2)  ;;  %v593_v16 = vld [vmem:[%s3244_s5 + $0x8] sm:$0xff] (!%p508_p2)  ;;  %v2774_v17 = vmov (!%p508_p2), 3  }
   0x9   : > { %2463 = vmatprep.subr.msk.mxu1 (!%p508_p2), %vm764_vm1, %v590_v14  ;;  %v592_v15 = vld [vmem:[%s3244_s5] sm:$0xff] (!%p508_p2)  ;;  %v594_v27 = vld [vmem:[%s3244_s5 + $0x10] sm:$0xff] (!%p508_p2)  ;;  %v595_v28 = vld [vmem:[%s3244_s5 + $0x18] sm:$0xff] (!%p508_p2)  ;;  %vm757_vm2 = vcmask (!%p508_p2), 31744   ;;  %vm855_vm3 = vcmask (!%p508_p2), 523264   ;;  %vm1208_vm4 = vcmask (!%p508_p2), 294144  }
   0xa   : > { %2464 = vmatpush3.msk.msra.mxu1 (!%p508_p2), %vm764_vm1, %v590_v14  ;;  %v2623_v18 = vpack.c.bf16 (!%p508_p2), %v593_v16, %v592_v15  ;;  %v2627_v31 = vpack.c.bf16 (!%p508_p2), %v595_v28, %v594_v27  ;;  %v596_v32 = vld [vmem:[%s3244_s5 + $0x20] sm:$0xff] (!%p508_p2)  ;;  %v597_v33 = vld [vmem:[%s3244_s5 + $0x28] sm:$0xff] (!%p508_p2)  ;;  %v598_v35 = vld [vmem:[%s3244_s5 + $0x30] sm:$0xff] (!%p508_p2)  ;;  %vm1198_vm5 = vcmask (!%p508_p2), 261120   ;;  %vm2237_vm6 = vcmask (!%p508_p2), 253952  }
   0xb   : > { %v2631_v34 = vpack.c.bf16 (!%p508_p2), %v597_v33, %v596_v32  ;;  %v599_v36 = vld [vmem:[%s3244_s5 + $0x38] sm:$0xff] (!%p508_p2)  ;;  %v2335_v38 = vld [vmem:[%s3243_s4] ss:$0 sm:$0xff] (!%p508_p2)  ;;  %v610_v53 = vld [vmem:[%s3247_s8 + $0x8] sm:$0xff] (!%p508_p2)  ;;  %v2775_v33 = vmov (!%p508_p2), 0.0|0.0   ;;  %vm2777_vm7 = vmmov (!%p508_p2), 0  }
   0xc   : > { %2624 = vmatprep.subr.bf16.mxu1 (!%p508_p2), %v2623_v18  ;;  %v2635_v37 = vpack.c.bf16 (!%p508_p2), %v599_v36, %v598_v35  ;;  %v609_v52 = vld [vmem:[%s3247_s8] sm:$0xff] (!%p508_p2)  ;;  %v611_v57 = vld [vmem:[%s3247_s8 + $0x10] sm:$0xff] (!%p508_p2)  ;;  %v612_v58 = vld [vmem:[%s3247_s8 + $0x18] sm:$0xff] (!%p508_p2)  ;;  %vm1616_vm9 = vcmask (!%p508_p2), 27648  }
   0xd   : > { %v2643_v56 = vpack.c.bf16 (!%p508_p2), %v610_v53, %v609_v52  ;;  %v2647_v59 = vpack.c.bf16 (!%p508_p2), %v612_v58, %v611_v57  ;;  %v613_v60 = vld [vmem:[%s3247_s8 + $0x20] sm:$0xff] (!%p508_p2)  ;;  %v614_v61 = vld [vmem:[%s3247_s8 + $0x28] sm:$0xff] (!%p508_p2)  ;;  %v615_v63 = vld [vmem:[%s3247_s8 + $0x30] sm:$0xff] (!%p508_p2) }
   0xe   : > { %v2651_v62 = vpack.c.bf16 (!%p508_p2), %v614_v61, %v613_v60  ;;  %v2343_v16 = vld [vmem:[%s3245_s6] ss:$0 sm:$0xff] (!%p508_p2) }
   0xf   : > { %s3262_s25 = smov (!%p567_p3, %s2322_s25), 1 }
  0x10   : > { %s2369_s26 = sshll.u32 %s3262_s25, 4  ;;  %s2370_s0 = sshll.u32 %s3262_s25, 3 }
  0x11   : > { %s581_s29 = scalar_lea.vmem %s3241_s2, %s2369_s26  ;;  %s576_s1 = scalar_lea.vmem %s3259_s19, %s2370_s0 }
  0x12   : > { %v2886_v2 = vld [vmem:[%s581_s29] sm:$0xff]  ;;  %v2890_v3 = vld [vmem:[%s581_s29 + $0x8] sm:$0xff]  ;;  %s571_s23 = scalar_lea.vmem %s3260_s22, %s2369_s26  ;;  %s3050_s18 = scalar_lea.vmem %s3256_s17, %s3262_s25 }
  0x13   : > { %647 = vperm.xlu0 %2740, %v2886_v2   ;;  %658 = vperm.xlu1 %2741, %v2886_v2   ;;  %v2373_v4 = vld [vmem:[%s576_s1] sm:$0xff]   ;;  %v638_v8 = vld [vmem:[%s571_s23 + $0x8] sm:$0xff]  ;;  %s2776_s19 = smov 96  }
  0x14   : > { %v2898_v5 = vunpack.c.l.bf16 %v2373_v4  ;;  %v637_v7 = vld [vmem:[%s571_s23] sm:$0xff]  ;;  %v2911_v13 = vunpack.c.h.bf16 %v2373_v4 }
  0x15   : > { %v601_v4 = vld [vmem:[%s3246_s7] sm:$0xff] }
  0x16   : > { %2460 = vmatprep.mubr.msk.f32.mxu0 %vm667_vm0, %v2898_v5 }
  0x17   : > { %652 = vperm.xlu0 %2740, %v2890_v3   ;;  %662 = vperm.xlu1 %2741, %v2890_v3  }
  0x1b   : > { %2743 = vset.pattern.permute.xlu1 %v2774_v17  ;;  %2742 = vset.pattern.permute.xlu0 %v2774_v17 }
  0x1c   : > { %850 = vperm.xlu1 %2743, %v2890_v3   ;;  %846 = vperm.xlu0 %2742, %v2886_v2  }
  0x20   : > { %2744 = vset.pattern.permute.xlu0 %v2772_v0  ;;  %v616_v0 = vld [vmem:[%s3247_s8 + $0x38] sm:$0xff] }
  0x21   : > { %v2655_v1 = vpack.c.bf16 %v616_v0, %v615_v63 }
  0x92   : > { %v2905_v6 = vpop.permute.xlu0 %647  ;;  %v2930_v19 = vpop.permute.xlu1 %658 }
  0x93   : > { %v655_v10 = vmul.f32 %v2905_v6, %v637_v7  ;;  %v602_v7 = vld [vmem:[%s3246_s7 + $0x8] sm:$0xff] }
  0x95   : > { %v665_v22 = vmul.f32 %v2930_v19, %v655_v10 }
  0x96   : > { %v2907_v9 = vpop.permute.xlu0 %652  ;;  %v2932_v20 = vpop.permute.xlu1 %662 }
  0x97   : > { %v656_v11 = vmul.f32 %v2907_v9, %v638_v8  ;;  %v2659_v8 = vpack.c.bf16 %v602_v7, %v601_v4 }
  0x99   : > { %v2619_v12 = vpack.c.bf16 %v656_v11, %v655_v10  ;;  %v666_v21 = vmul.f32 %v2932_v20, %v656_v11 }
  0x9b   : > { %2620 = vmatprep.subr.bf16.mxu0 %v2619_v12  ;;  %v2961_v44 = vpop.permute.xlu0 %846  ;;  %v2963_v46 = vpop.permute.xlu1 %850 }
  0x9c   : > { %2622 = vmatpush3.bf16.msra.mxu0 %v2619_v12 }
  0x9f   : > { %2461 = vmatmul.mubr.msk.f32.vlgmr.msra.gmra.mrb[0].mxu0 %vm667_vm0, %v2911_v13 }
  0xa0   : > { %2491 = vmatprep.mubr.msk.f32.mxu0 %vm667_vm0, %v2898_v5 }
 0x172   : > { %v2462_v23 = vpop.f32.mrb[0].mxu0 }
 0x173   : > { %v746_v24 = vadd.f32 %v2462_v23, %v666_v21  ;;  %v740_v25 = vpop.f32.mrb[1].mxu0 }
 0x174   : > { %v741_v26 = vadd.f32 %v740_v25, %v665_v22 }
 0x175   : > { %v750_v30 = vmul.f32 %v746_v24, %v2907_v9 }
 0x176   : > { %v749_v29 = vmul.f32 %v741_v26, %v2905_v6 }
 0x178   : > { %2465 = vmatprep.mubr.msk.f32.mxu1 %vm757_vm2, %v749_v29 }
 0x179   : > { %2466 = vmatmul.mubr.msk.f32.vlgmr.msra.gmra.mrb[0].mxu1 %vm757_vm2, %v750_v30  ;;  %v607_v30 = vld [vmem:[%s3246_s7 + $0x30] sm:$0xff] }
 0x17a   : > { %2626 = vmatpush3.bf16.msra.mxu1 %v2623_v18 }
 0x17b   : > { %2628 = vmatprep.subr.bf16.mxu1 %v2627_v31 }
 0x17e   : > { %2630 = vmatpush3.bf16.msra.mxu1 %v2627_v31  ;;  %v608_v31 = vld [vmem:[%s3246_s7 + $0x38] sm:$0xff] }
 0x17f   : > { %2632 = vmatprep.subr.bf16.mxu1 %v2631_v34  ;;  %v2671_v32 = vpack.c.bf16 %v608_v31, %v607_v30  ;;  %v585_v31 = vlaneseq }
 0x182   : > { %2634 = vmatpush3.bf16.msra.mxu1 %v2631_v34  ;;  %v2348_v34 = vld [vmem:[%s3248_s9] ss:$0 sm:$0xff] }
 0x183   : > { %2636 = vmatprep.subr.bf16.mxu1 %v2635_v37 }
 0x186   : > { %2638 = vmatpush3.bf16.msra.mxu1 %v2635_v37 }
 0x187   : > { %2675 = vmatprep.subr.bf16.mxu1 %v2775_v33 }
 0x24c   : > { %v2467_v39 = vpop.f32.mrb[0].mxu1 }
 0x24d   : > { %v840_v40 = vadd.f32 %v2467_v39, %v2335_v38  ;;  %v834_v41 = vpop.f32.mrb[1].mxu1 }
 0x24e   : > { %v835_v42 = vadd.f32 %v2335_v38, %v834_v41 }
 0x24f   : > { %v844_v43 = vmax.f32 %v840_v40, 0.0 }
 0x250   : > { %v843_v45 = vmax.f32 %v835_v42, 0.0 }
 0x251   : > { %v2967_v48 = vmul.f32 %v2963_v46, %v844_v43 }
 0x252   : > { %v853_v47 = vmul.f32 %v2961_v44, %v843_v45 }
 0x254   : > { %2484 = vmatprep.mubr.msk.f32.mxu1 %vm855_vm3, %v853_v47 }
 0x255   : > { %2485 = vmatmul.mubr.msk.f32.vlgmr.msra.gmra.mrb[2].mxu1 %vm855_vm3, %v2967_v48 }
 0x328   : > { %v2486_v49 = vpop.f32.mrb[2].mxu1 }
 0x329   : > { %v938_v50 = vmul.f32 %v2486_v49, %v2907_v9  ;;  %v928_v51 = vpop.f32.mrb[3].mxu1 }
 0x32a   : > { %v937_v54 = vmul.f32 %v928_v51, %v2905_v6 }
 0x32b   : > { %v940_v10 = vmul.f32 %v938_v50, %v2932_v20  ;;  %v603_v20 = vld [vmem:[%s3246_s7 + $0x10] sm:$0xff] }
 0x32c   : > { %v2639_v55 = vpack.c.bf16 %v938_v50, %v937_v54  ;;  %v939_v12 = vmul.f32 %v937_v54, %v2930_v19  ;;  %v604_v19 = vld [vmem:[%s3246_s7 + $0x18] sm:$0xff] }
 0x32d   : > { %v2663_v28 = vpack.c.bf16 %v604_v19, %v603_v20 }
 0x32e   : > { %2640 = vmatprep.subr.bf16.mxu0 %v2639_v55 }
 0x32f   : > { %2642 = vmatpush3.bf16.msra.mxu0 %v2639_v55 }
 0x330   : > { %2644 = vmatprep.subr.bf16.mxu0 %v2643_v56 }
 0x332   : > { %2492 = vmatmul.mubr.msk.f32.vlgmr.msra.gmra.mrb[2].mxu0 %vm667_vm0, %v2911_v13 }
 0x333   : > { %2646 = vmatpush3.bf16.msra.mxu0 %v2643_v56 }
 0x334   : > { %2648 = vmatprep.subr.bf16.mxu0 %v2647_v59 }
 0x337   : > { %2650 = vmatpush3.bf16.msra.mxu0 %v2647_v59 }
 0x338   : > { %2652 = vmatprep.subr.bf16.mxu0 %v2651_v62 }
 0x33b   : > { %2654 = vmatpush3.bf16.msra.mxu0 %v2651_v62 }
 0x33c   : > { %2656 = vmatprep.subr.bf16.mxu0 %v2655_v1 }
 0x33f   : > { %2658 = vmatpush3.bf16.msra.mxu0 %v2655_v1 }
 0x340   : > { %2660 = vmatprep.subr.bf16.mxu0 %v2659_v8 }
 0x405   : > { %v2493_v11 = vpop.f32.mrb[2].mxu0 }
 0x406   : > { %v1013_v14 = vadd.f32 %v2493_v11, %v940_v10  ;;  %v1007_v15 = vpop.f32.mrb[3].mxu0 }
 0x407   : > { %v1008_v17 = vadd.f32 %v1007_v15, %v939_v12 }
 0x408   : > { %v1017_v18 = vmul.f32 %v1013_v14, %v2907_v9  ;;  %v606_v9 = vld [vmem:[%s3246_s7 + $0x28] sm:$0xff] }
 0x409   : > { %v1016_v21 = vmul.f32 %v1008_v17, %v2905_v6  ;;  %v605_v6 = vld [vmem:[%s3246_s7 + $0x20] sm:$0xff] }
 0x40a   : > { %v1025_v22 = vadd.f32 %v2343_v16, %v1017_v18  ;;  %v2667_v29 = vpack.c.bf16 %v606_v9, %v605_v6 }
 0x40b   : > { %v1024_v23 = vadd.f32 %v2343_v16, %v1016_v21  ;;  %v2778_v21 = vmov 0.0  }
 0x40c   : > { %v1027_v24 = vmax.f32 %v1025_v22, 0.0  ;;  %2536 = vmatprep.mubr.msk.f32.mxu1 %vm2777_vm7, %v2778_v21 }
 0x40d   : > { %v1026_v25 = vmax.f32 %v1024_v23, 0.0 }
 0x40e   : > { %v1029_v27 = vmul.f32 %v1027_v24, %v2963_v46 }
 0x40f   : > { %v1028_v26 = vmul.f32 %v1026_v25, %v2961_v44 }
 0x411   : > { %2510 = vmatprep.mubr.msk.f32.mxu0 %vm855_vm3, %v1028_v26 }
 0x412   : > { %2511 = vmatmul.mubr.msk.f32.vlgmr.msra.gmra.mrb[4].mxu0 %vm855_vm3, %v1029_v27 }
 0x413   : > { %2662 = vmatpush3.bf16.msra.mxu0 %v2659_v8  ;;  %2529 = vmatprep.mubr.msk.f32.mxu0 %vm855_vm3, %v853_v47 }
 0x414   : > { %2664 = vmatprep.subr.bf16.mxu0 %v2663_v28 }
 0x417   : > { %2666 = vmatpush3.bf16.msra.mxu0 %v2663_v28 }
 0x418   : > { %2668 = vmatprep.subr.bf16.mxu0 %v2667_v29 }
 0x41b   : > { %2670 = vmatpush3.bf16.msra.mxu0 %v2667_v29 }
 0x41c   : > { %2672 = vmatprep.subr.bf16.mxu0 %v2671_v32 }
 0x41f   : > { %2674 = vmatpush3.bf16.msra.mxu0 %v2671_v32  ;;  %v3092_v32 = vshrl.u32 %v585_v31, 7 }
 0x420   : > { %2576 = vmatprep.subr.mxu0 %v2778_v21 }
 0x422   : > { %2530 = vmatmul.mubr.msk.f32.vlgmr.msra.gmra.mrb[4].mxu0 %vm855_vm3, %v2967_v48  ;;  %vm2249_vm3 = vcmask 1040896  }
 0x423   : > { %2578 = vmatprep.mubr.msk.f32.mxu0 %vm2777_vm7, %v2778_v21 }
 0x4f5   : > { %v2531_v35 = vpop.f32.mrb[4].mxu0 }
 0x4f6   : > { %v1193_v36 = vadd.f32 %v2531_v35, %v2348_v34  ;;  %v1177_v37 = vpop.f32.mrb[5].mxu0 }
 0x4f7   : > { %v1192_v38 = vadd.f32 %v2348_v34, %v1177_v37  ;;  %v3094_v34 = vand.u32 127, %v585_v31 }
 0x4f8   : > { %v1195_v39 = vmax.f32 %v1193_v36, 0.0 }
 0x4f9   : > { %v1194_v40 = vmax.f32 %v1192_v38, 0.0  ;;  %vm589_vm8 = vcmp.eq.s32.totalorder %v3092_v32, %v3094_v34  ;;  %vm2230_vm12 = vcmp.eq.s32.totalorder %v3094_v34, 1  ;;  %vm2227_vm13 = vcmp.eq.s32.totalorder %v3094_v34, 0 }
 0x4fa   : > { %v1197_v41 = vmul.f32 %v1195_v39, %v2963_v46  ;;  %vm2234_vm15 = vcmp.eq.s32.totalorder %v3094_v34, 2  ;;  %v634_v34 = vld [vmem:[%s3254_s15 + $0x10] sm:$0xff] }
 0x4fb   : > { %v1196_v42 = vmul.f32 %v1194_v40, %v2961_v44 }
 0x4fc   : > { %v1212_v43 = vsel %vm1208_vm4, %v1197_v41, -inf  ;;  %v1200_v45 = vsel %vm1198_vm5, %v1197_v41, 0.0 }
 0x4fd   : > { %1213 = vmax.xlane.f32.xlu0 %v1212_v43  ;;  %v1209_v47 = vsel %vm1208_vm4, %v1196_v42, -inf  ;;  %v2676_v48 = vpack.c.bf16 %v1197_v41, %v1196_v42  ;;  %v1199_v49 = vsel %vm1198_vm5, %v1196_v42, 0.0 }
 0x4fe   : > { %1210 = vmax.xlane.f32.xlu1 %v1209_v47  ;;  %v1201_v50 = vadd.f32 %v1200_v45, %v1199_v49 }
 0x4ff   : > { %2677 = vmatpush3.bf16.msra.mxu1 %v2676_v48 }
 0x500   : > { %v1202_v51 = vrot.slane %v1201_v50, 4 }
 0x502   : > { %v1203_v52 = vadd.f32 %v1202_v51, %v1201_v50  ;;  %v618_v50 = vld [vmem:[%s3249_s10] sm:$0xff]  ;;  %v619_v51 = vld [vmem:[%s3249_s10 + $0x8] sm:$0xff] }
 0x504   : > { %v1204_v53 = vrot.slane %v1203_v52, 2 }
 0x506   : > { %v1205_v54 = vadd.f32 %v1204_v53, %v1203_v52  ;;  %v2689_v52 = vpack.c.bf16 %v619_v51, %v618_v50  ;;  %v2359_v51 = vld [vmem:[%s3250_s11] ss:$0 sm:$0xff] }
 0x508   : > { %v1206_v55 = vrot.slane %v1205_v54, 1 }
 0x50a   : > { %v1207_v56 = vadd.f32 %v1206_v55, %v1205_v54  ;;  %v620_v54 = vld [vmem:[%s3249_s10 + $0x10] sm:$0xff]  ;;  %v621_v55 = vld [vmem:[%s3249_s10 + $0x18] sm:$0xff] }
 0x50c   : > { %2238 = vst.msk [vmem:[%s3050_s18] sm:$0x1] %vm2237_vm6, %v1207_v56  ;;  %v2692_v56 = vpack.c.bf16 %v621_v55, %v620_v54  ;;  %v628_v54 = vld [vmem:[%s3253_s14] sm:$0xff]  ;;  %v629_v55 = vld [vmem:[%s3253_s14 + $0x8] sm:$0xff] }
 0x58a   : > { %v1214_v57 = vpop.xlane.xlu0 %1213 }
 0x58b   : > { %v1216_v58 = vsub.f32 %v1197_v41, %v1214_v57  ;;  %v1211_v59 = vpop.xlane.xlu1 %1210 }
 0x58c   : > { %v1215_v60 = vsub.f32 %v1196_v42, %v1211_v59 }
 0x58d   : > { %v1219_v61 = vmul.f32 1.442695, %v1216_v58 }
 0x58e   : > { %v1217_v62 = vmul.f32 1.442695, %v1215_v60 }
 0x58f   : > { %2746 = vpow2.f32 %v1219_v61 }
 0x590   : > { %2748 = vpow2.f32 %v1217_v62 }
 0x599   : > { %v2747_v63 = vpop.eup %2746 }
 0x59a   : > { %v2749_v0 = vpop.eup %2748  ;;  %1225 = vrot.lane.b32.xlu1 %v2747_v63, %s2776_s19 }
 0x59b   : > { %1223 = vrot.lane.b32.xlu0 %v2749_v0, %s2776_s19 }
 0x60c   : > { %v1226_v1 = vpop.permute.xlu1 %1225 }
 0x60d   : > { %v1224_v4 = vpop.permute.xlu0 %1223  ;;  %v1232_v7 = vsel %vm757_vm2, %v1226_v1, 0.0 }
 0x60e   : > { %1233 = vadd.xlane.f32.xlu0 %v1232_v7  ;;  %v1229_v8 = vsel %vm757_vm2, %v1224_v4, 0.0 }
 0x60f   : > { %1230 = vadd.xlane.f32.xlu1 %v1229_v8 }
 0x69b   : > { %v1234_v10 = vpop.xlane.xlu0 %1233 }
 0x69c   : > { %2750 = vrcp.f32 %v1234_v10  ;;  %v1231_v11 = vpop.xlane.xlu1 %1230 }
 0x69d   : > { %2752 = vrcp.f32 %v1231_v11 }
 0x6a6   : > { %v2751_v12 = vpop.eup %2750 }
 0x6a7   : > { %v2753_v14 = vpop.eup %2752  ;;  %v1238_v15 = vmul.f32 %v2751_v12, %v2747_v63 }
 0x6a8   : > { %v1236_v16 = vmul.f32 %v2753_v14, %v2749_v0 }
 0x6a9   : > { %v1240_v17 = vmul.f32 %v1238_v15, %v2963_v46 }
 0x6aa   : > { %v3059_v18 = vmul.f32 %v1236_v16, %v2961_v44  ;;  %v2779_v44 = vmov 2  }
 0x6ab   : > { %1245 = vrot.lane.b32.xlu1 %v1240_v17, %s2776_s19 }
 0x6ac   : > { %1243 = vrot.lane.b32.xlu0 %v3059_v18, %s2776_s19 }
 0x71d   : > { %v1246_v22 = vpop.permute.xlu1 %1245 }
 0x71e   : > { %v1244_v46 = vpop.permute.xlu0 %1243 }
 0x71f   : > { %v2678_v23 = vpack.c.bf16 %v1246_v22, %v1244_v46  ;;  %1249 = vxpose.xlu1.b32.start [1/2] (short) (narrow) %v1244_v46, 8 }
 0x721   : > { %2679 = vmatprep.subr.bf16.mxu1 %v2678_v23 }
 0x723   : > { %1250 = vxpose.xlu1.b32.end [2/2] (short) (narrow) %v1246_v22, 8 }
 0x741   : > { %2745 = vset.pattern.permute.xlu1 %v2779_v44 }
 0x742   : > { %1584 = vperm.xlu1 %2745, %v2886_v2  }
 0x746   : > { %1588 = vperm.xlu1 %2745, %v2890_v3  }
 0x79f   : > { %v1265_v24 = vpop.trf.xlu1 }
 0x7a0   : > { %2537 = vmatmul.mubr.msk.f32.vlgmr.msra.gmra.mrb[4].mxu1 %vm667_vm0, %v1265_v24 }
 0x7a1   : > { %2681 = vmatpush3.bf16.msra.mxu1 %v2678_v23  ;;  %2543 = vmatprep.mubr.msk.f32.mxu1 %vm667_vm0, %v2898_v5 }
 0x7a2   : > { %2682 = vmatprep.subr.bf16.mxu1 %v2775_v33 }
 0x7a4   : > { %2544 = vmatmul.mubr.msk.f32.vlgmr.msra.gmra.mrb[6].mxu1 %vm667_vm0, %v2911_v13 }
 0x7a5   : > { %2550 = vmatprep.mubr.msk.f32.mxu1 %vm2777_vm7, %v2778_v21 }
 0x7c1   : > { %v3079_v25 = vpop.permute.xlu1 %1584 }
 0x7c2   : > { %v1591_v0 = vmul.f32 %v3079_v25, %v3059_v18 }
 0x7c4   : > { %v1593_v4 = vmul.f32 %v1591_v0, %v3059_v18 }
 0x7c5   : > { %v1589_v2 = vpop.permute.xlu1 %1588 }
 0x7c6   : > { %v1592_v20 = vmul.f32 %v1589_v2, %v1240_v17 }
 0x7c8   : > { %v1594_v3 = vmul.f32 %v1592_v20, %v1240_v17  ;;  %v623_v20 = vld [vmem:[%s3251_s12] sm:$0xff] }
 0x7ca   : > { %1599 = vrot.lane.b32.xlu1 %v1594_v3, %s2776_s19  ;;  %v624_v3 = vld [vmem:[%s3251_s12 + $0x8] sm:$0xff] }
 0x83c   : > { %v1600_v12 = vpop.permute.xlu1 %1599 }
 0x83d   : > { %v1604_v16 = vsel %vm757_vm2, %v1600_v12, 0.0 }
 0x873   : > { %v1350_v19 = vpop.f32.mrb[4].mxu1 }
 0x874   : > { %v2538_v26 = vpop.f32.mrb[5].mxu1 }
 0x875   : > { %v625_v26 = vld [vmem:[%s3251_s12 + $0x10] sm:$0xff] }
 0x877   : > { %v2545_v27 = vpop.f32.mrb[6].mxu1 }
 0x878   : > { %v1570_v28 = vmul.f32 %v2545_v27, %v1246_v22  ;;  %v1420_v5 = vpop.f32.mrb[7].mxu1 }
 0x879   : > { %v2683_v6 = vpack.c.bf16 %v2545_v27, %v1420_v5  ;;  %v1569_v9 = vmul.f32 %v1420_v5, %v1244_v46  ;;  %v626_v27 = vld [vmem:[%s3251_s12 + $0x18] sm:$0xff] }
 0x87a   : > { %v1572_v29 = vsel %vm757_vm2, %v1570_v28, 0.0  ;;  %v2698_v28 = vpack.c.bf16 %v626_v27, %v625_v26 }
 0x87b   : > { %2684 = vmatpush3.bf16.msra.mxu1 %v2683_v6  ;;  %v1571_v13 = vsel %vm757_vm2, %v1569_v9, 0.0 }
 0x87c   : > { %2685 = vmatprep.subr.bf16.mxu1 %v2775_v33  ;;  %v1573_v30 = vadd.f32 %v1572_v29, %v1571_v13 }
 0x87e   : > { %2551 = vmatmul.mubr.msk.f32.vlgmr.msra.gmra.mrb[8].mxu1 %vm667_vm0, %v1265_v24 }
 0x87f   : > { %2687 = vmatpush3.bf16.msra.mxu1 %v2678_v23  ;;  %2557 = vmatprep.mubr.msk.f32.mxu1 %vm2777_vm7, %v2778_v21 }
 0x880   : > { %2560 = vmatprep.subr.mxu1 %v2778_v21 }
 0x882   : > { %2558 = vmatmul.mubr.msk.f32.vlgmr.msra.gmra.mrb[10].mxu1 %vm667_vm0, %v1265_v24 }
 0x883   : > { %2562 = vmatprep.mubr.msk.f32.mxu1 %vm2777_vm7, %v2778_v21 }
 0x951   : > { %v1495_v35 = vpop.f32.mrb[8].mxu1 }
 0x952   : > { %v3101_v36 = vsel %vm589_vm8, 0.0, %v1495_v35  ;;  %v2552_v37 = vpop.f32.mrb[9].mxu1 }
 0x953   : > { %v1652_v38 = vsel %vm1616_vm9, %v3101_v36, 0.0 }
 0x954   : > { %1653 = vadd.xlane.f32.xlu0 %v1652_v38 }
 0x955   : > { %v3105_v39 = vpop.f32.mrb[10].mxu1 }
 0x956   : > { %v2559_v40 = vpop.f32.mrb[11].mxu1  ;;  %v1615_v7 = vmul.f32 %v3105_v39, %v3105_v39 }
 0x958   : > { %v1617_v8 = vsel %vm1616_vm9, %v1615_v7, 0.0 }
 0x9e1   : > { %v1654_v41 = vpop.xlane.xlu0 %1653 }
 0x9e2   : > { %2754 = vrsqrt.f32 %v1654_v41  ;;  %vm1657_vm10 = vcmp.eq.f32.partialorder %v1654_v41, inf  ;;  %v1660_v45 = vand.u32 2147483648, %v1654_v41  ;;  %vm1659_vm11 = vcmp.eq.f32.partialorder %v1654_v41, 0.0 }
 0x9ec   : > { %v2755_v42 = vpop.eup %2754 }
 0x9ed   : > { %v1656_v43 = vmul.f32 %v2755_v42, %v1654_v41 }
 0x9ef   : > { %v1658_v47 = vsel %vm1657_vm10, %v1654_v41, %v1656_v43 }
 0x9f0   : > { %v1661_v48 = vsel %vm1659_vm11, %v1660_v45, %v1658_v47 }
 0x9f1   : > { %v1662_v49 = vadd.f32 1e-15, %v1661_v48 }
 0x9f3   : > { %2756 = vrcp.f32 %v1662_v49 }
 0x9fd   : > { %v3113_v53 = vpop.eup %2756 }
 0x9fe   : > { %2561 = vmatpush3.msk.msra.mxu1 %vm764_vm1, %v3113_v53 }
 0x9ff   : > { %2563 = vmatmul.mubr.msk.f32.vlgmr.msra.gmra.mrb[12].mxu1 %vm757_vm2, %v3101_v36  ;;  %2688 = vmatprep.subr.bf16.mxu1 %v2775_v33 }
 0xa00   : > { %2690 = vmatpush3.bf16.msra.mxu1 %v2689_v52  ;;  %2573 = vmatprep.mubr.msk.f32.mxu1 %vm2777_vm7, %v2778_v21 }
 0xa01   : > { %2691 = vmatprep.subr.bf16.mxu1 %v2775_v33 }
 0xa04   : > { %2693 = vmatpush3.bf16.msra.mxu1 %v2692_v56 }
 0xa05   : > { %2592 = vmatprep.subr.mxu1 %v2778_v21 }
 0xa07   : > { %2574 = vmatmul.mubr.msk.f32.vlgmr.msra.gmra.mrb[14].mxu1 %vm1198_vm5, %v1350_v19  ;;  %v2695_v19 = vpack.c.bf16 %v624_v3, %v623_v20 }
 0xa08   : > { %2594 = vmatprep.mubr.msk.f32.mxu1 %vm2777_vm7, %v2778_v21 }
 0xad2   : > { %v1737_v57 = vpop.f32.mrb[12].mxu1 }
 0xad3   : > { %v1741_v58 = vmul.f32 %v3113_v53, %v1737_v57  ;;  %v2564_v59 = vpop.f32.mrb[13].mxu1  ;;  %v1630_v57 = vsel %vm589_vm8, 0.5, %v2778_v21 }
 0xad4   : > { %v2707_v59 = vpack.c.bf16 %v629_v55, %v628_v54 }
 0xad5   : > { %v1742_v60 = vadd.f32 1.0, %v1741_v58 }
 0xad7   : > { %v1743_v61 = vmax.f32 %v1742_v60, 1.0 }
 0xad9   : > { %2758 = vrsqrt.f32 %v1743_v61 }
 0xada   : > { %v1814_v62 = vpop.f32.mrb[14].mxu1 }
 0xadb   : > { %v2575_v63 = vpop.f32.mrb[15].mxu1 }
 0xadc   : > { %v631_v63 = vld [vmem:[%s3253_s14 + $0x18] sm:$0xff] }
 0xae3   : > { %v2759_v1 = vpop.eup %2758 }
 0xae4   : > { %1820 = vperm.xlu0 %2744, %v2759_v1  }
 0xae8   : > { %1597 = vrot.lane.b32.xlu0 %v1593_v4, %s2776_s19 }
 0xb07   : > { %1574 = vadd.xlane.f32.xlu0 %v1573_v30 }
 0xb0b   : > { %1618 = vadd.xlane.f32.xlu0 %v1617_v8 }
 0xb63   : > { %v3141_v10 = vpop.permute.xlu0 %1820 }
 0xb64   : > { %v1823_v11 = vmul.f32 %v3141_v10, %v1814_v62  ;;  %v630_v62 = vld [vmem:[%s3253_s14 + $0x10] sm:$0xff] }
 0xb65   : > { %v2710_v32 = vpack.c.bf16 %v631_v63, %v630_v62 }
 0xb66   : > { %v1824_v14 = vmul.f32 %v3113_v53, %v1823_v11 }
 0xb67   : > { %v1598_v15 = vpop.permute.xlu0 %1597 }
 0xb68   : > { %v1603_v17 = vsel %vm757_vm2, %v1598_v15, 0.0  ;;  %2577 = vmatpush3.msk.msra.mxu0 %vm764_vm1, %v1824_v14 }
 0xb69   : > { %2579 = vmatmul.mubr.msk.f32.vlgmr.msra.gmra.mrb[6].mxu0 %vm757_vm2, %v3101_v36  ;;  %v1605_v18 = vadd.f32 %v1604_v16, %v1603_v17  ;;  %2694 = vmatprep.subr.bf16.mxu0 %v2775_v33 }
 0xb6a   : > { %2589 = vmatprep.mubr.msk.f32.mxu0 %vm2777_vm7, %v2778_v21  ;;  %2696 = vmatpush3.bf16.msra.mxu0 %v2695_v19 }
 0xb6b   : > { %1606 = vadd.xlane.f32.xlu1 %v1605_v18  ;;  %2697 = vmatprep.subr.bf16.mxu0 %v2775_v33 }
 0xb6e   : > { %2699 = vmatpush3.bf16.msra.mxu0 %v2698_v28 }
 0xb6f   : > { %2706 = vmatprep.subr.bf16.mxu0 %v2775_v33 }
 0xb94   : > { %v1575_v22 = vpop.xlane.xlu0 %1574 }
 0xb95   : > { %v1576_v46 = vrot.slane %v1575_v22, 4 }
 0xb97   : > { %v1577_v23 = vadd.f32 %v1576_v46, %v1575_v22 }
 0xb98   : > { %v1619_v5 = vpop.xlane.xlu0 %1618 }
 0xb99   : > { %v1578_v44 = vrot.slane %v1577_v23, 2  ;;  %v1620_v6 = vrot.slane %v1619_v5, 4 }
 0xb9b   : > { %v1579_v24 = vadd.f32 %v1578_v44, %v1577_v23  ;;  %v1621_v9 = vadd.f32 %v1620_v6, %v1619_v5 }
 0xb9d   : > { %v1580_v25 = vrot.slane %v1579_v24, 1  ;;  %v1622_v29 = vrot.slane %v1621_v9, 2 }
 0xb9f   : > { %v1581_v2 = vadd.f32 %v1580_v25, %v1579_v24  ;;  %v1623_v35 = vadd.f32 %v1622_v29, %v1621_v9  ;;  %v633_v9 = vld [vmem:[%s3254_s15 + $0x8] sm:$0xff] }
 0xba1   : > { %2714 = vpush %v1581_v2  ;;  %v1624_v40 = vrot.slane %v1623_v35, 1 }
 0xba3   : > { %v1625_v43 = vadd.f32 %v1624_v40, %v1623_v35  ;;  %v2363_v40 = vld [vmem:[%s3252_s13] ss:$0 sm:$0xff] }
 0xbd2   : > { %s3167_s21 = spop %2714 }
 0xbd3   : > { %v2228_v24 = vstv %s3167_s21 }
 0xbd4   : > { %v2229_v26 = vsel %vm2227_vm13, %v2228_v24, 0.0 }
 0xbf8   : > { %v1607_v13 = vpop.xlane.xlu1 %1606 }
 0xbf9   : > { %v1608_v30 = vrot.slane %v1607_v13, 4 }
 0xbfb   : > { %v1609_v31 = vadd.f32 %v1608_v30, %v1607_v13  ;;  %v635_v13 = vld [vmem:[%s3254_s15 + $0x18] sm:$0xff] }
 0xbfc   : > { %v2704_v30 = vpack.c.bf16 %v635_v13, %v634_v34 }
 0xbfd   : > { %v1610_v37 = vrot.slane %v1609_v31, 2 }
 0xbff   : > { %v1611_v38 = vadd.f32 %v1610_v37, %v1609_v31 }
 0xc01   : > { %v1612_v41 = vrot.slane %v1611_v38, 1 }
 0xc03   : > { %v1613_v42 = vadd.f32 %v1612_v41, %v1611_v38 }
 0xc05   : > { %2716 = vpush %v1613_v42 }
 0xc06   : > { %2718 = vpush %v1625_v43  ;;  %v2366_v43 = vld [vmem:[%s3255_s16] ss:$0 sm:$0xff] }
 0xc36   : > { %s3169_s22 = spop %2716 }
 0xc37   : > { %s2719_s23 = spop %2718  ;;  %v2231_v23 = vstv %s3169_s22  ;;  %s2780_s22 = smov 64  }
 0xc38   : > { %v1627_v45 = vstv %s2719_s23  ;;  %v2232_v2 = vsel %vm2230_vm12, %v2231_v23, 0.0 }
 0xc39   : > { %2760 = vrsqrt.f32 %v1627_v45 }
 0xc3c   : > { %v1894_v47 = vpop.f32.mrb[6].mxu0 }
 0xc3d   : > { %v1898_v48 = vmul.f32 %v3113_v53, %v1894_v47  ;;  %v2580_v49 = vpop.f32.mrb[7].mxu0 }
 0xc3f   : > { %v1899_v50 = vadd.f32 %v1898_v48, %v1823_v11 }
 0xc41   : > { %v1900_v52 = vmul.f32 %v1899_v50, %v3141_v10 }
 0xc43   : > { %v2761_v56 = vpop.eup %2760  ;;  %v1907_v58 = vadd.f32 %v2359_v51, %v1900_v52 }
 0xc44   : > { %v1629_v60 = vmul.f32 %v2761_v56, %v3105_v39 }
 0xc45   : > { %v1908_v61 = vmax.f32 %v1907_v58, 0.0 }
 0xc46   : > { %v1631_v0 = vsub.f32 %v1629_v60, %v1630_v57 }
 0xc47   : > { %2590 = vmatmul.mubr.msk.f32.vlgmr.msra.gmra.mrb[8].mxu0 %vm1198_vm5, %v1908_v61 }
 0xc48   : > { %2708 = vmatpush3.bf16.msra.mxu0 %v2707_v59  ;;  %v1632_v1 = vmul.f32 %v1631_v0, %v1631_v0  ;;  %2616 = vmatprep.mubr.msk.f32.mxu0 %vm2777_vm7, %v2778_v21 }
 0xc49   : > { %2709 = vmatprep.subr.bf16.mxu0 %v2775_v33 }
 0xc4a   : > { %v1633_v39 = vsel %vm1616_vm9, %v1632_v1, 0.0 }
 0xc4b   : > { %1634 = vadd.xlane.f32.xlu0 %v1633_v39 }
 0xc4c   : > { %2711 = vmatpush3.bf16.msra.mxu0 %v2710_v32 }
 0xc4f   : > { %2617 = vmatmul.mubr.msk.f32.vlgmr.msra.gmra.mrb[10].mxu0 %vm1198_vm5, %v1908_v61 }
 0xcd8   : > { %v1635_v4 = vpop.xlane.xlu0 %1634 }
 0xcd9   : > { %v1636_v7 = vrot.slane %v1635_v4, 4 }
 0xcdb   : > { %v1637_v8 = vadd.f32 %v1636_v7, %v1635_v4 }
 0xcdd   : > { %v1638_v11 = vrot.slane %v1637_v8, 2 }
 0xcdf   : > { %v1639_v12 = vadd.f32 %v1638_v11, %v1637_v8 }
 0xce1   : > { %v1640_v14 = vrot.slane %v1639_v12, 1 }
 0xce3   : > { %v1641_v15 = vadd.f32 %v1640_v14, %v1639_v12 }
 0xce5   : > { %2720 = vpush %v1641_v15 }
 0xd16   : > { %s2721_s23 = spop %2720 }
 0xd17   : > { %v1643_v16 = vstv %s2721_s23 }
 0xd18   : > { %2762 = vrsqrt.f32 %v1643_v16  ;;  %vm1646_vm14 = vcmp.eq.f32.partialorder %v1643_v16, inf  ;;  %v1649_v19 = vand.u32 2147483648, %v1643_v16  ;;  %vm1648_vm0 = vcmp.eq.f32.partialorder %v1643_v16, 0.0 }
 0xd1a   : > { %v1978_v17 = vpop.f32.mrb[8].mxu0 }
 0xd1b   : > { %v1982_v18 = vmul.f32 %v1978_v17, %v3141_v10  ;;  %v2591_v22 = vpop.f32.mrb[9].mxu0 }
 0xd1d   : > { %v1983_v46 = vmul.f32 %v3113_v53, %v1982_v18 }
 0xd1f   : > { %2593 = vmatpush3.msk.msra.mxu1 %vm764_vm1, %v1983_v46  ;;  %vm2219_vm1 = vcmask 257024  }
 0xd20   : > { %2595 = vmatmul.mubr.msk.f32.vlgmr.msra.gmra.mrb[16].mxu1 %vm757_vm2, %v3101_v36  ;;  %2700 = vmatprep.subr.bf16.mxu1 %v2775_v33  ;;  %v2233_v36 = vadd.f32 %v2232_v2, %v2229_v26  ;;  %vm2243_vm2 = vcmask 516352  }
 0xd21   : > { %2605 = vmatprep.mubr.msk.f32.mxu1 %vm2777_vm7, %v2778_v21  ;;  %v632_v21 = vld [vmem:[%s3254_s15] sm:$0xff] }
 0xd22   : > { %v2763_v44 = vpop.eup %2762  ;;  %v2207_v25 = vpop.f32.mrb[10].mxu0  ;;  %v2701_v29 = vpack.c.bf16 %v633_v9, %v632_v21 }
 0xd23   : > { %v1645_v20 = vmul.f32 %v2763_v44, %v1643_v16  ;;  %v2618_v3 = vpop.f32.mrb[11].mxu0 }
 0xd24   : > { %2702 = vmatpush3.bf16.msra.mxu1 %v2701_v29 }
 0xd25   : > { %v1647_v27 = vsel %vm1646_vm14, %v1643_v16, %v1645_v20  ;;  %2703 = vmatprep.subr.bf16.mxu1 %v2775_v33 }
 0xd26   : > { %v1650_v28 = vsel %vm1648_vm0, %v1649_v19, %v1647_v27 }
 0xd27   : > { %v2235_v5 = vsel %vm2234_vm15, %v1650_v28, 0.0 }
 0xd28   : > { %v2236_v6 = vadd.f32 %v2235_v5, %v2233_v36  ;;  %2705 = vmatpush3.bf16.msra.mxu1 %v2704_v30 }
 0xd2a   : > { %2246 = vrot.lane.b32.xlu0 %v2236_v6, %s2780_s22  ;;  %s2781_s22 = smov 32  }
 0xd9c   : > { %v2247_v58 = vpop.permute.xlu0 %2246 }
 0xdf3   : > { %v2053_v31 = vpop.f32.mrb[16].mxu1 }
 0xdf4   : > { %v2057_v35 = vmul.f32 %v3113_v53, %v2053_v31  ;;  %v2596_v37 = vpop.f32.mrb[17].mxu1 }
 0xdf6   : > { %v2058_v38 = vadd.f32 %v2057_v35, %v1982_v18 }
 0xdf8   : > { %v2059_v33 = vmul.f32 %v2058_v38, %v3141_v10 }
 0xdfa   : > { %v2066_v41 = vadd.f32 %v2363_v40, %v2059_v33 }
 0xdfc   : > { %v2067_v42 = vmax.f32 %v2066_v41, 0.0 }
 0xdfe   : > { %2606 = vmatmul.mubr.msk.f32.vlgmr.msra.gmra.mrb[18].mxu1 %vm1198_vm5, %v2067_v42 }
 0xed1   : > { %v2137_v45 = vpop.f32.mrb[18].mxu1 }
 0xed2   : > { %v2208_v47 = vadd.f32 %v2207_v25, %v2137_v45  ;;  %v2607_v48 = vpop.f32.mrb[19].mxu1 }
 0xed4   : > { %v2217_v53 = vadd.f32 %v2366_v43, %v2208_v47 }
 0xed6   : > { %v2218_v49 = vmax.f32 %v2217_v53, 0.0 }
 0xed8   : > { %v2220_v50 = vsel %vm2219_vm1, %v2218_v49, 0.0 }
 0xed9   : > { %v2221_v51 = vrot.slane %v2220_v50, 4 }
 0xedb   : > { %v2222_v52 = vadd.f32 %v2221_v51, %v2220_v50 }
 0xedd   : > { %v2223_v10 = vrot.slane %v2222_v52, 2 }
 0xedf   : > { %v2224_v54 = vadd.f32 %v2223_v10, %v2222_v52 }
 0xee1   : > { %v2225_v55 = vrot.slane %v2224_v54, 1 }
 0xee3   : > { %v2226_v56 = vadd.f32 %v2225_v55, %v2224_v54 }
 0xee5   : > { %2240 = vrot.lane.b32.xlu1 %v2226_v56, %s2781_s22 }
 0xf57   : > { %v2241_v57 = vpop.permute.xlu1 %2240 }
 0xf58   : > { %2244 = vst.msk [vmem:[%s3050_s18] sm:$0x1] %vm2243_vm2, %v2241_v57 }
 0xf59   : > { %2250 = vst.msk [vmem:[%s3050_s18] sm:$0x1] %vm2249_vm3, %v2247_v58 }
 0xf5a PF: > { %s27_s24 = sadd.s32 1, %s2770_s24  }
 0xf5b   : > { %p24_p4 = scmp.ge.s32.totalorder %s27_s24, 4  }
 0xf5d   :  { %26 = sbr.rel (!%p24_p4) target bundleno = 3 (0x3), region = 124 }

</bundles_post_ra>
